<compile_context>
chip_gen: v7x
topology: tpu7x:2x2x1
jax: 0.10.0
libtpu: 0.0.40
codegen_flags: <defaults>
</compile_context>

<pallas_src>
import functools

import jax
import jax.numpy as jnp
from jax import lax
from jax.experimental import pallas as pl
from jax.experimental.pallas import tpu as pltpu


def _csa_kernel(gamma_ref, xs_ref, xr_ref, m_ref, wv_ref, o_ref, *, batch_block):
    # gamma_ref : (1,)            f32, SMEM
    # xs_ref    : (bn, C, L)      f32   flattened skip
    # xr_ref    : (bn, C, L)      bf16  flattened res (value-path input)
    # m_ref     : (C, C)          f32   Wq^T @ Wk (precomputed host-side)
    # wv_ref    : (C, C)          bf16  spectrally-normalized value weight
    # o_ref     : (bn, C, L)      output
    gamma = gamma_ref[0]
    m = m_ref[...]
    wv = wv_ref[...]

    # batch_block is a tiny static Python int (1 on v7x, N on v5e/v6e).
    for n in range(batch_block):
        xs = xs_ref[n]                                                  # (C, L) f32

        # --- scores: s[i, j] = xs[:, i]^T (Wq^T Wk) xs[:, j]  (f32 path) ---
        mxs = jnp.dot(m, xs, preferred_element_type=jnp.float32)       # (C, L)
        s = lax.dot_general(
            xs, mxs,
            dimension_numbers=(((0,), (0,)), ((), ())),
            preferred_element_type=jnp.float32)                         # (L, L)

        # softmax over the key axis i (== torch dim=1); normalization deferred.
        p = jnp.exp(s - jnp.max(s, axis=0, keepdims=True))              # (L, L) f32
        den = jnp.sum(p, axis=0, keepdims=True)                         # (1, L) f32

        # --- value path: bf16 operands (DMA-cheap), f32 accumulation ---------
        h = jnp.dot(wv, xr_ref[n], preferred_element_type=jnp.float32)  # (C, L)
        attn = jnp.dot(h, p, preferred_element_type=jnp.float32)        # (C, L) unnormalized

        # fold gamma into the per-column normalization: 2-vreg EUP reciprocal
        # + (C, L) broadcast multiply instead of an (L, L) divide pass.
        scale = gamma * pl.reciprocal(den, approx=True)                 # (1, L)

        # re-read xs from VMEM for the residual (don't pin it across softmax).
        o_ref[n] = (attn * scale + xs_ref[n]).astype(o_ref.dtype)


def _tensorcores_per_chip() -> int:
    """Best-effort TC-per-chip query; only affects grid shape (perf, not
    correctness), so fall back to 1 on anything unexpected."""
    try:
        kind = jax.devices()[0].device_kind.lower()
        if "v7" in kind or "7x" in kind:      # v7x: 2 TensorCores / chip
            return 2
    except Exception:
        pass
    return 1                                   # v5e / v6e: 1 TensorCore / chip


def conv_self_attention(skip, res, w_query, w_key, w_value, gamma, *,
                        batch_block=None):
    """Forward of ConvolutionalSelfAttention.

    skip, res        : (N, C, H, W)
    w_query, w_key   : (C // reduction, C)  effective (spectrally-normalized) weights
    w_value          : (C, C)
    gamma            : scalar
    returns          : (N, C, H, W), dtype of `skip`
    """
    N, C, H, W = skip.shape
    L = H * W

    xs = skip.reshape(N, C, L).astype(jnp.float32)       # no-op cast for f32 inputs
    xr = res.reshape(N, C, L).astype(jnp.bfloat16)       # value path: bf16 (half DMA)
    # Fuse the query/key projections: s = xs^T (Wq^T Wk) xs  (exact-equivalent).
    m = jnp.dot(w_query.astype(jnp.float32).T, w_key.astype(jnp.float32))   # (C, C)
    wv = w_value.astype(jnp.bfloat16)
    gamma_arr = jnp.asarray(gamma, jnp.float32).reshape(1)

    # Grid shaping: single-TC chips process the whole batch in one grid step
    # (amortizes per-step overhead); multi-TC chips keep batch as a parallel
    # grid axis so both cores get work.
    if batch_block is None:
        batch_block = 1 if _tensorcores_per_chip() > 1 else N
    if batch_block <= 0 or N % batch_block != 0:
        batch_block = 1
    bn = batch_block
    grid = (N // bn,)

    kernel = functools.partial(_csa_kernel, batch_block=bn)

    out = pl.pallas_call(
        kernel,
        out_shape=jax.ShapeDtypeStruct((N, C, L), skip.dtype),
        grid=grid,
        in_specs=[
            pl.BlockSpec(memory_space=pltpu.MemorySpace.SMEM),   # gamma scalar
            pl.BlockSpec((bn, C, L), lambda i: (i, 0, 0)),       # x_skip (f32)
            pl.BlockSpec((bn, C, L), lambda i: (i, 0, 0)),       # x_res  (bf16)
            pl.BlockSpec((C, C), lambda i: (0, 0)),              # M = Wq^T Wk (resident)
            pl.BlockSpec((C, C), lambda i: (0, 0)),              # W_v (bf16, resident)
        ],
        out_specs=pl.BlockSpec((bn, C, L), lambda i: (i, 0, 0)),
        compiler_params=pltpu.CompilerParams(
            dimension_semantics=("parallel",)),
    )(gamma_arr, xs, xr, m, wv)

    return out.reshape(N, C, H, W)


def _spectral_normalize(w):
    """Converged behaviour of torch.nn.utils.spectral_norm: W / sigma_max(W)."""
    sigma = jnp.linalg.svd(w, compute_uv=False)[0]
    return w / sigma


def _reference(skip, res, wq, wk, wv, gamma):
    """Pure-JAX f32 reference matching the PyTorch module semantics."""
    N, C, H, W = skip.shape
    L = H * W
    xs = skip.reshape(N, C, L).astype(jnp.float32)
    xr = res.reshape(N, C, L).astype(jnp.float32)
    f = jnp.einsum('qc,ncl->nql', wq, xs)
    g = jnp.einsum('qc,ncl->nql', wk, xs)
    h = jnp.einsum('oc,ncl->nol', wv, xr)
    s = jnp.einsum('nqi,nqj->nij', f, g)          # (N, L, L)
    beta = jax.nn.softmax(s, axis=1)              # softmax over dim=1 (key axis)
    o = gamma * jnp.einsum('nci,nij->ncj', h, beta) + xs
    return o.reshape(N, C, H, W)


if __name__ == "__main__":
    # ConvolutionalSelfAttention(n_channels=32, reduction=8) -> Cq = 4
    N, C, H, W = 2, 32, 16, 16          # L = 256 (lane-dense, multiple of 128)
    reduction = 8
    Cq = C // reduction

    key = jax.random.PRNGKey(0)
    k1, k2, k3, k4, k5 = jax.random.split(key, 5)
    skip = jax.random.normal(k1, (N, C, H, W), dtype=jnp.float32)
    res = jax.random.normal(k2, (N, C, H, W), dtype=jnp.float32)

    # Conv1d(k=1, bias=False) weights (squeezed to (out, in)), spectrally normalized.
    bound = 1.0 / (C ** 0.5)
    wq = _spectral_normalize(jax.random.uniform(k3, (Cq, C), jnp.float32, -bound, bound))
    wk = _spectral_normalize(jax.random.uniform(k4, (Cq, C), jnp.float32, -bound, bound))
    wv = _spectral_normalize(jax.random.uniform(k5, (C, C), jnp.float32, -bound, bound))

    # The module initializes gamma = 0 (output == skip); use a nonzero value so
    # the attention path is actually exercised by this check.
    gamma = 0.7

    out = conv_self_attention(skip, res, wq, wk, wv, gamma)
    out = jax.block_until_ready(out)

    ref = _reference(skip, res, wq, wk, wv, gamma)
    assert out.shape == (N, C, H, W), out.shape
    max_err = float(jnp.max(jnp.abs(out - ref)))
    assert jnp.allclose(out, ref, atol=2e-2, rtol=2e-2), max_err

    print("KERNEL_OK")
</pallas_src>

<mosaic_0001>
module attributes {stable_mosaic.version = 11 : i64} {
  func.func @_csa_kernel(%arg0: i32, %arg1: memref<1xf32, #tpu.memory_space<smem>>, %arg2: memref<2x32x256xf32, #tpu.memory_space<vmem>>, %arg3: memref<2x32x256xbf16, #tpu.memory_space<vmem>>, %arg4: memref<32x32xf32, #tpu.memory_space<vmem>>, %arg5: memref<32x32xbf16, #tpu.memory_space<vmem>>, %arg6: memref<2x32x256xf32, #tpu.memory_space<vmem>>) attributes {dimension_semantics = [#tpu.dimension_semantics<parallel>], iteration_bounds = array<i64: 1>, scalar_prefetch = 0 : i64, scratch_operands = 0 : i64, tpu.core_type = #tpu.core_type<tc>, window_params = [{transform_indices = @transform_0, window_bounds = array<i64: 1>}, {transform_indices = @transform_1, window_bounds = array<i64: 2, 32, 256>}, {transform_indices = @transform_2, window_bounds = array<i64: 2, 32, 256>}, {pipeline_mode = #tpu.pipeline_mode<synchronous>, transform_indices = @transform_3, window_bounds = array<i64: 32, 32>}, {pipeline_mode = #tpu.pipeline_mode<synchronous>, transform_indices = @transform_4, window_bounds = array<i64: 32, 32>}, {transform_indices = @transform_5, window_bounds = array<i64: 2, 32, 256>}]} {
    %c0 = arith.constant 0 : index
    %0 = memref.load %arg1[%c0] : memref<1xf32, #tpu.memory_space<smem>>
    %c0_0 = arith.constant 0 : index
    %c0_1 = arith.constant 0 : index
    %1 = vector.load %arg4[%c0_0, %c0_1] : memref<32x32xf32, #tpu.memory_space<vmem>>, vector<32x32xf32>
    %c0_2 = arith.constant 0 : index
    %c0_3 = arith.constant 0 : index
    %2 = vector.load %arg5[%c0_2, %c0_3] : memref<32x32xbf16, #tpu.memory_space<vmem>>, vector<32x32xbf16>
    %c0_4 = arith.constant 0 : index
    %c0_5 = arith.constant 0 : index
    %c0_6 = arith.constant 0 : index
    %3 = vector.load %arg2[%c0_4, %c0_5, %c0_6] : memref<2x32x256xf32, #tpu.memory_space<vmem>>, vector<1x32x256xf32>
    %4 = vector.shape_cast %3 : vector<1x32x256xf32> to vector<32x256xf32>
    %cst = arith.constant dense<0.000000e+00> : vector<32x256xf32>
    %5 = tpu.matmul %1, %4, %cst {dimension_numbers = #tpu.dot_dimension_numbers<[1], [0], [0], [1], [0, 0, 1, 1], [], []>} : vector<32x32xf32>, vector<32x256xf32>, vector<32x256xf32> -> vector<32x256xf32>
    %cst_7 = arith.constant dense<0.000000e+00> : vector<256x256xf32>
    %6 = tpu.matmul %4, %5, %cst_7 {dimension_numbers = #tpu.dot_dimension_numbers<[0], [0], [1], [1], [0, 1, 1, 1], [], []>} : vector<32x256xf32>, vector<32x256xf32>, vector<256x256xf32> -> vector<256x256xf32>
    %cst_8 = arith.constant dense<0xFF800000> : vector<256xf32>
    %7 = vector.multi_reduction <maximumf>, %6, %cst_8 [0] : vector<256x256xf32> to vector<256xf32>
    %8 = vector.shape_cast %7 : vector<256xf32> to vector<1x256xf32>
    %9 = vector.broadcast %8 : vector<1x256xf32> to vector<256x256xf32>
    %10 = arith.subf %6, %9 : vector<256x256xf32>
    %11 = math.exp %10 : vector<256x256xf32>
    %cst_9 = arith.constant dense<0.000000e+00> : vector<256xf32>
    %12 = vector.multi_reduction <add>, %11, %cst_9 [0] : vector<256x256xf32> to vector<256xf32>
    %13 = vector.shape_cast %12 : vector<256xf32> to vector<1x256xf32>
    %c0_10 = arith.constant 0 : index
    %c0_11 = arith.constant 0 : index
    %c0_12 = arith.constant 0 : index
    %14 = vector.load %arg3[%c0_10, %c0_11, %c0_12] : memref<2x32x256xbf16, #tpu.memory_space<vmem>>, vector<1x32x256xbf16>
    %15 = vector.shape_cast %14 : vector<1x32x256xbf16> to vector<32x256xbf16>
    %cst_13 = arith.constant dense<0.000000e+00> : vector<32x256xf32>
    %16 = tpu.matmul %2, %15, %cst_13 {dimension_numbers = #tpu.dot_dimension_numbers<[1], [0], [0], [1], [0, 0, 1, 1], [], []>} : vector<32x32xbf16>, vector<32x256xbf16>, vector<32x256xf32> -> vector<32x256xf32>
    %cst_14 = arith.constant dense<0.000000e+00> : vector<32x256xf32>
    %17 = tpu.matmul %16, %11, %cst_14 {dimension_numbers = #tpu.dot_dimension_numbers<[1], [0], [0], [1], [0, 0, 1, 1], [], []>} : vector<32x256xf32>, vector<256x256xf32>, vector<32x256xf32> -> vector<32x256xf32>
    %18 = tpu.reciprocal %13 {approx = true} : vector<1x256xf32> -> vector<1x256xf32>
    %19 = vector.broadcast %0 : f32 to vector<1x256xf32>
    %20 = arith.mulf %19, %18 : vector<1x256xf32>
    %21 = vector.broadcast %20 : vector<1x256xf32> to vector<32x256xf32>
    %22 = arith.mulf %17, %21 : vector<32x256xf32>
    %c0_15 = arith.constant 0 : index
    %c0_16 = arith.constant 0 : index
    %c0_17 = arith.constant 0 : index
    %23 = vector.load %arg2[%c0_15, %c0_16, %c0_17] : memref<2x32x256xf32, #tpu.memory_space<vmem>>, vector<1x32x256xf32>
    %24 = vector.shape_cast %23 : vector<1x32x256xf32> to vector<32x256xf32>
    %25 = arith.addf %22, %24 : vector<32x256xf32>
    %c0_18 = arith.constant 0 : index
    %c0_19 = arith.constant 0 : index
    %c0_20 = arith.constant 0 : index
    %26 = vector.load %arg6[%c0_18, %c0_19, %c0_20] : memref<2x32x256xf32, #tpu.memory_space<vmem>>, vector<1x32x256xf32>
    %27 = vector.shape_cast %26 : vector<1x32x256xf32> to vector<32x256xf32>
    %28 = vector.shape_cast %25 : vector<32x256xf32> to vector<1x32x256xf32>
    tpu.vector_store %arg6[%c0_18, %c0_19, %c0_20], %28 {strides = array<i32>} : memref<2x32x256xf32, #tpu.memory_space<vmem>>, vector<1x32x256xf32>,
    %c1 = arith.constant 1 : index
    %c0_21 = arith.constant 0 : index
    %c0_22 = arith.constant 0 : index
    %29 = vector.load %arg2[%c1, %c0_21, %c0_22] : memref<2x32x256xf32, #tpu.memory_space<vmem>>, vector<1x32x256xf32>
    %30 = vector.shape_cast %29 : vector<1x32x256xf32> to vector<32x256xf32>
    %cst_23 = arith.constant dense<0.000000e+00> : vector<32x256xf32>
    %31 = tpu.matmul %1, %30, %cst_23 {dimension_numbers = #tpu.dot_dimension_numbers<[1], [0], [0], [1], [0, 0, 1, 1], [], []>} : vector<32x32xf32>, vector<32x256xf32>, vector<32x256xf32> -> vector<32x256xf32>
    %cst_24 = arith.constant dense<0.000000e+00> : vector<256x256xf32>
    %32 = tpu.matmul %30, %31, %cst_24 {dimension_numbers = #tpu.dot_dimension_numbers<[0], [0], [1], [1], [0, 1, 1, 1], [], []>} : vector<32x256xf32>, vector<32x256xf32>, vector<256x256xf32> -> vector<256x256xf32>
    %cst_25 = arith.constant dense<0xFF800000> : vector<256xf32>
    %33 = vector.multi_reduction <maximumf>, %32, %cst_25 [0] : vector<256x256xf32> to vector<256xf32>
    %34 = vector.shape_cast %33 : vector<256xf32> to vector<1x256xf32>
    %35 = vector.broadcast %34 : vector<1x256xf32> to vector<256x256xf32>
    %36 = arith.subf %32, %35 : vector<256x256xf32>
    %37 = math.exp %36 : vector<256x256xf32>
    %cst_26 = arith.constant dense<0.000000e+00> : vector<256xf32>
    %38 = vector.multi_reduction <add>, %37, %cst_26 [0] : vector<256x256xf32> to vector<256xf32>
    %39 = vector.shape_cast %38 : vector<256xf32> to vector<1x256xf32>
    %c1_27 = arith.constant 1 : index
    %c0_28 = arith.constant 0 : index
    %c0_29 = arith.constant 0 : index
    %40 = vector.load %arg3[%c1_27, %c0_28, %c0_29] : memref<2x32x256xbf16, #tpu.memory_space<vmem>>, vector<1x32x256xbf16>
    %41 = vector.shape_cast %40 : vector<1x32x256xbf16> to vector<32x256xbf16>
    %cst_30 = arith.constant dense<0.000000e+00> : vector<32x256xf32>
    %42 = tpu.matmul %2, %41, %cst_30 {dimension_numbers = #tpu.dot_dimension_numbers<[1], [0], [0], [1], [0, 0, 1, 1], [], []>} : vector<32x32xbf16>, vector<32x256xbf16>, vector<32x256xf32> -> vector<32x256xf32>
    %cst_31 = arith.constant dense<0.000000e+00> : vector<32x256xf32>
    %43 = tpu.matmul %42, %37, %cst_31 {dimension_numbers = #tpu.dot_dimension_numbers<[1], [0], [0], [1], [0, 0, 1, 1], [], []>} : vector<32x256xf32>, vector<256x256xf32>, vector<32x256xf32> -> vector<32x256xf32>
    %44 = tpu.reciprocal %39 {approx = true} : vector<1x256xf32> -> vector<1x256xf32>
    %45 = vector.broadcast %0 : f32 to vector<1x256xf32>
    %46 = arith.mulf %45, %44 : vector<1x256xf32>
    %47 = vector.broadcast %46 : vector<1x256xf32> to vector<32x256xf32>
    %48 = arith.mulf %43, %47 : vector<32x256xf32>
    %c1_32 = arith.constant 1 : index
    %c0_33 = arith.constant 0 : index
    %c0_34 = arith.constant 0 : index
    %49 = vector.load %arg2[%c1_32, %c0_33, %c0_34] : memref<2x32x256xf32, #tpu.memory_space<vmem>>, vector<1x32x256xf32>
    %50 = vector.shape_cast %49 : vector<1x32x256xf32> to vector<32x256xf32>
    %51 = arith.addf %48, %50 : vector<32x256xf32>
    %c1_35 = arith.constant 1 : index
    %c0_36 = arith.constant 0 : index
    %c0_37 = arith.constant 0 : index
    %52 = vector.load %arg6[%c1_35, %c0_36, %c0_37] : memref<2x32x256xf32, #tpu.memory_space<vmem>>, vector<1x32x256xf32>
    %53 = vector.shape_cast %52 : vector<1x32x256xf32> to vector<32x256xf32>
    %54 = vector.shape_cast %51 : vector<32x256xf32> to vector<1x32x256xf32>
    tpu.vector_store %arg6[%c1_35, %c0_36, %c0_37], %54 {strides = array<i32>} : memref<2x32x256xf32, #tpu.memory_space<vmem>>, vector<1x32x256xf32>,
    return
  }
  func.func @transform_0(%arg0: i32) -> i32 {
    %c0_i32 = arith.constant 0 : i32
    %c0_i32_0 = arith.constant 0 : i32
    return %c0_i32 : i32
  }
  func.func @transform_1(%arg0: i32) -> (i32, i32, i32) {
    %c0_i32 = arith.constant 0 : i32
    %c0_i32_0 = arith.constant 0 : i32
    %c0_i32_1 = arith.constant 0 : i32
    return %arg0, %c0_i32, %c0_i32_0 : i32, i32, i32
  }
  func.func @transform_2(%arg0: i32) -> (i32, i32, i32) {
    %c0_i32 = arith.constant 0 : i32
    %c0_i32_0 = arith.constant 0 : i32
    %c0_i32_1 = arith.constant 0 : i32
    return %arg0, %c0_i32, %c0_i32_0 : i32, i32, i32
  }
  func.func @transform_3(%arg0: i32) -> (i32, i32) {
    %c0_i32 = arith.constant 0 : i32
    %c0_i32_0 = arith.constant 0 : i32
    %c0_i32_1 = arith.constant 0 : i32
    return %c0_i32, %c0_i32_0 : i32, i32
  }
  func.func @transform_4(%arg0: i32) -> (i32, i32) {
    %c0_i32 = arith.constant 0 : i32
    %c0_i32_0 = arith.constant 0 : i32
    %c0_i32_1 = arith.constant 0 : i32
    return %c0_i32, %c0_i32_0 : i32, i32
  }
  func.func @transform_5(%arg0: i32) -> (i32, i32, i32) {
    %c0_i32 = arith.constant 0 : i32
    %c0_i32_0 = arith.constant 0 : i32
    %c0_i32_1 = arith.constant 0 : i32
    return %arg0, %c0_i32, %c0_i32_0 : i32, i32, i32
  }
}

</mosaic_0001>

<bundles_post_ra>
// kernel: tpu_custom_call.1
= control target key start
LH: loop header
LB: loop body
LE: loop exit
PB: predicated region body
PF: predicated region fallthrough
CT: control target
= control target key end

     0   :  { %11 = vsyncpa [#allocation4], 0  ;;  %s4534_s0 = inlined_call_operand.<no memory space> [shape: f32[1], index: 0, kind: input, shape index: {}]   ;;  %s4535_s1 = inlined_call_operand.hbm [shape: f32[2,32,256], index: 1, kind: input, shape index: {}]   ;;  %s4536_s2 = inlined_call_operand.hbm [shape: bf16[2,32,256], index: 2, kind: input, shape index: {}]   ;;  %s4537_s3 = inlined_call_operand.hbm [shape: f32[32,32], index: 3, kind: input, shape index: {}]   ;;  %s4538_s4 = inlined_call_operand.hbm [shape: bf16[32,32], index: 4, kind: input, shape index: {}]   ;;  %s4539_s5 = inlined_call_operand.hbm [shape: f32[2,32,256], index: 5, kind: output, shape index: {}]  }
   0x1   :  { %12 = vsyncpa [#allocation7], 0 }
   0x2   :  { %13 = vsyncpa [#allocation10], 0 }
   0x3   :  { %14 = vsyncpa [#allocation5], 0  ;;  %s2912_s18 = smov [#allocation6]   ;;  %s2794_s22 = scalar_lea.hbm %s4536_s2, 1024 }
   0x4   :  { %s34_s19 = sshll.u32 %s2912_s18, 4  ;;  %p2795_p0 = scmp.ne.s32.totalorder %s4536_s2, %s2794_s22  ;;  %s35_s19 = int_to_ptr.vmem [resolvable:$true] %s34_s19 }
   0x5   :  { %p2798_p1 = scmp.lt.u32.totalorder %s2794_s22, %s4536_s2 }
   0x7   :  { %p2800_p2 = pnand %p2798_p1, %p2795_p0 }
   0x9   :  { %2803 = shalt.err (!%p2800_p2)
}
   0xa   :  { %s2804_s27 = scalar_lea.vmem %s35_s19, 1024  ;;  %p2809_p4 = scmp.lt.s32.totalorder %s35_s19, %s35_s19 }
   0xb   :  { %p2805_p3 = scmp.ne.s32.totalorder %s35_s19, %s2804_s27  ;;  %p2810_p5 = scmp.lt.s32.totalorder %s2804_s27, %s2804_s27 }
   0xd   :  { %p2811_p6 = por %p2810_p5, %p2809_p4 }
   0xf   :  { %p2812_p7 = pnand %p2811_p6, %p2805_p3 }
  0x11   :  { %2815 = shalt.err (!%p2812_p7)
}
  0x12   :  { %s2913_s28 = smov 128   ;;  %s2914_s29 = smov 8  }
  0x13   :  { %40 = dma.hbm_to_vmem [thread:$0]  %s4536_s2, 1024, %s35_s19, [#allocation7], %s2913_s28, %s2913_s28, %s2914_s29  }
  0x14   :  { %s2915_s7 = smov [#allocation3]   ;;  %s2816_s11 = scalar_lea.hbm %s4535_s1, 2048 }
  0x15   :  { %s22_s8 = sshll.u32 %s2915_s7, 4  ;;  %p2817_p8 = scmp.ne.s32.totalorder %s4535_s1, %s2816_s11  ;;  %s23_s8 = int_to_ptr.vmem [resolvable:$true] %s22_s8 }
  0x16   :  { %p2820_p9 = scmp.lt.u32.totalorder %s2816_s11, %s4535_s1 }
  0x18   :  { %p2822_p10 = pnand %p2820_p9, %p2817_p8 }
  0x1a   :  { %2825 = shalt.err (!%p2822_p10)
}
  0x1b   :  { %s2826_s16 = scalar_lea.vmem %s23_s8, 2048  ;;  %p2831_p12 = scmp.lt.s32.totalorder %s23_s8, %s23_s8 }
  0x1c   :  { %p2827_p11 = scmp.ne.s32.totalorder %s23_s8, %s2826_s16  ;;  %p2832_p13 = scmp.lt.s32.totalorder %s2826_s16, %s2826_s16 }
  0x1e   :  { %p2833_p0 = por %p2832_p13, %p2831_p12 }
  0x20   :  { %p2834_p1 = pnand %p2833_p0, %p2827_p11 }
  0x22   :  { %2837 = shalt.err (!%p2834_p1)
}
  0x23   :  { %s2916_s2 = smov 256   ;;  %s2917_s17 = smov 16  }
  0x24   :  { %28 = dma.hbm_to_vmem [thread:$0]  %s4535_s1, 2048, %s23_s8, [#allocation4], %s2916_s2, %s2916_s2, %s2917_s17  }
  0x25   :  { %s2918_s20 = smov [#allocation8]   ;;  %s2919_s22 = smov [#allocation9]  }
  0x26   :  { %s46_s21 = sshll.u32 %s2918_s20, 4  ;;  %s58_s23 = sshll.u32 %s2919_s22, 4  ;;  %s47_s21 = int_to_ptr.vmem [resolvable:$true] %s46_s21  ;;  %s2985_s23 = int_to_ptr.vmem [resolvable:$true] %s58_s23 }
  0x27   :  { %s2838_s26 = scalar_lea.hbm %s4537_s3, 512 }
  0x28   :  { %p2839_p2 = scmp.ne.s32.totalorder %s4537_s3, %s2838_s26  ;;  %p2842_p3 = scmp.lt.u32.totalorder %s2838_s26, %s4537_s3 }
  0x2a   :  { %p2844_p4 = pnand %p2842_p3, %p2839_p2 }
  0x2c   :  { %2847 = shalt.err (!%p2844_p4)
}
  0x2d   :  { %s2848_s1 = scalar_lea.vmem %s47_s21, 512  ;;  %p2853_p6 = scmp.lt.s32.totalorder %s47_s21, %s47_s21 }
  0x2e   :  { %p2849_p5 = scmp.ne.s32.totalorder %s47_s21, %s2848_s1  ;;  %p2854_p7 = scmp.lt.s32.totalorder %s2848_s1, %s2848_s1 }
  0x30   :  { %p2855_p8 = por %p2854_p7, %p2853_p6 }
  0x32   :  { %p2856_p9 = pnand %p2855_p8, %p2849_p5 }
  0x34   :  { %2859 = shalt.err (!%p2856_p9)
}
  0x35   :  { %52 = dma.hbm_to_vmem [thread:$0]  %s4537_s3, 512, %s47_s21, [#allocation7], %s2913_s28, %s2913_s28, %s2914_s29  }
  0x36   :  { %s2860_s12 = scalar_lea.hbm %s4538_s4, 256 }
  0x37   :  { %p2861_p10 = scmp.ne.s32.totalorder %s4538_s4, %s2860_s12  ;;  %p2864_p11 = scmp.lt.u32.totalorder %s2860_s12, %s4538_s4 }
  0x39   :  { %p2866_p12 = pnand %p2864_p11, %p2861_p10 }
  0x3b   :  { %2869 = shalt.err (!%p2866_p12)
}
  0x3c   :  { %s2870_s18 = scalar_lea.vmem %s2985_s23, 256  ;;  %p2875_p0 = scmp.lt.s32.totalorder %s2985_s23, %s2985_s23 }
  0x3d   :  { %p2871_p13 = scmp.ne.s32.totalorder %s2985_s23, %s2870_s18  ;;  %p2876_p1 = scmp.lt.s32.totalorder %s2870_s18, %s2870_s18 }
  0x3f   :  { %p2877_p2 = por %p2876_p1, %p2875_p0 }
  0x41   :  { %p2878_p3 = pnand %p2877_p2, %p2871_p13 }
  0x43   :  { %2881 = shalt.err (!%p2878_p3)
}
  0x44   :  { %s2920_s3 = smov 64   ;;  %s2921_s28 = smov 4  }
  0x45   :  { %64 = dma.hbm_to_vmem [thread:$0]  %s4538_s4, 256, %s2985_s23, [#allocation10], %s2920_s3, %s2920_s3, %s2921_s28  }
  0x46   :  { %2904 = dma.done.wait [#allocation4], 2048  }
  0x47   :  { %2905 = vsyncadd [#allocation4], 4294965248 }
  0x48   :  { %2906 = dma.done.wait [#allocation7], 1536  }
  0x49   :  { %2907 = vsyncadd [#allocation7], 4294965760 }
  0x4a   :  { %2908 = dma.done.wait [#allocation10], 256  }
  0x4b   :  { %2909 = vsyncadd [#allocation10], 4294967040  ;;  %v4541_v0 = vmov 0.0   ;;  %v88_v1 = vld [vmem:[#allocation3 + $0x8] sm:$0xff]  ;;  %v90_v2 = vld [vmem:[#allocation3 + $0x18] sm:$0xff]  ;;  %vm95_vm0 = vcmask 261120  }
  0x4c   :  { %172 = vmatprep.mubr.f32.mxu1 %v4541_v0  ;;  %v87_v3 = vld [vmem:[#allocation3] sm:$0xff]  ;;  %v2321_v4 = vpack.c.bf16 %v90_v2, %v88_v1  ;;  %v89_v5 = vld [vmem:[#allocation3 + $0x10] sm:$0xff]  ;;  %v92_v6 = vld [vmem:[#allocation3 + $0x28] sm:$0xff]  ;;  %229 = vxpose.xlu1.b32.start [1/4] (short) %v88_v1, 128  ;;  %v4540_v60 = vmov 0  }
  0x4d   :  { %v94_v7 = vld [vmem:[#allocation3 + $0x38] sm:$0xff]  ;;  %197 = vxpose.xlu0.b32.start [1/4] (short) %v87_v3, 128  ;;  %v2323_v8 = vpack.c.bf16 %v89_v5, %v87_v3  ;;  %v91_v10 = vld [vmem:[#allocation3 + $0x20] sm:$0xff]  ;;  %v93_v11 = vld [vmem:[#allocation3 + $0x30] sm:$0xff]  ;;  %1026 = vmatprep.mubr.bf16.mxu0 %v4540_v60 }
  0x4e   :  { %v2325_v9 = vpack.c.bf16 %v94_v7, %v92_v6  ;;  %2322 = vmatprep.subr.bf16.mxu1 %v2321_v4  ;;  %v2327_v12 = vpack.c.bf16 %v93_v11, %v91_v10  ;;  %v79_v13 = vld [vmem:[#allocation8] sm:$0xff]  ;;  %v80_v14 = vld [vmem:[#allocation8 + $0x8] sm:$0xff]  ;;  %v81_v15 = vld [vmem:[#allocation8 + $0x10] sm:$0xff] }
  0x4f   :  { %2324 = vmatpush1.bf16.msra.mxu1 %v2323_v8  ;;  %v82_v16 = vld [vmem:[#allocation8 + $0x18] sm:$0xff]  ;;  %v2494_v34 = vld [vmem:[#allocation6 + $0x4] ss:$8 sps:$4 sm:$0xff]   ;;  %v2496_v35 = vld [vmem:[#allocation6] ss:$8 sps:$4 sm:$0xff]  }
  0x50   :  { %2326 = vmatprep.subr.bf16.mxu1 %v2325_v9  ;;  %230 = vxpose.xlu1.b32.cont [2/4] (short) %v90_v2, 128  ;;  %v2497_v56 = vld [vmem:[#allocation6 + $0x14] ss:$8 sps:$4 sm:$0xff]   ;;  %v2499_v57 = vld [vmem:[#allocation6 + $0x10] ss:$8 sps:$4 sm:$0xff]   ;;  %v2500_v59 = vld [vmem:[#allocation9] sm:$0xff]  }
  0x51   :  { %198 = vxpose.xlu0.b32.cont [2/4] (short) %v89_v5, 128  ;;  %994 = vmatprep.subr.bf16.mxu0 %v2494_v34  ;;  %v2501_v62 = vld [vmem:[#allocation9 + $0x8] sm:$0xff]  }
  0x52   :  { %995 = vmatpush1.bf16.msra.mxu0 %v2496_v35 }
  0x53   :  { %2328 = vmatpush1.bf16.msra.mxu1 %v2327_v12  ;;  %996 = vmatprep.subr.bf16.mxu0 %v2497_v56 }
  0x54   :  { %231 = vxpose.xlu1.b32.cont [3/4] (short) %v92_v6, 128 }
  0x55   :  { %199 = vxpose.xlu0.b32.cont [3/4] (short) %v91_v10, 128 }
  0x56   :  { %2235 = vmatmul.mubr.msk.f32.vlgmr.msra.gmra.mrb[0].mxu1 %vm95_vm0, %v79_v13  ;;  %997 = vmatpush1.bf16.msra.mxu0 %v2499_v57 }
  0x57   :  { %178 = vmatprep.mubr.f32.mxu1 %v4541_v0 }
  0x58   :  { %232 = vxpose.xlu1.b32.end [4/4] (short) %v94_v7, 128 }
  0x59   :  { %200 = vxpose.xlu0.b32.end [4/4] (short) %v93_v11, 128  ;;  %2277 = vmatmul.mubr.msk.bf16.vlgmr.msra.gmra.mrb[0].mxu0 %vm95_vm0, %v2500_v59 }
  0x5a   :  { %2236 = vmatmul.mubr.msk.f32.gmra.mrb[2].mxu1 %vm95_vm0, %v80_v14  ;;  %1036 = vmatprep.mubr.bf16.mxu0 %v4540_v60 }
  0x5b   :  { %184 = vmatprep.mubr.f32.mxu1 %v4541_v0 }
  0x5e   :  { %2237 = vmatmul.mubr.msk.f32.gmra.mrb[4].mxu1 %vm95_vm0, %v81_v15 }
  0x5f   :  { %190 = vmatprep.mubr.f32.mxu1 %v4541_v0 }
  0x61   :  { %2278 = vmatmul.mubr.msk.bf16.gmra.mrb[4].mxu0 %vm95_vm0, %v2501_v62 }
  0x62   :  { %2238 = vmatmul.mubr.msk.f32.gmra.mrb[6].mxu1 %vm95_vm0, %v82_v16 }
  0x63   :  { %421 = vmatprep.mubr.f32.mxu1 %v4541_v0 }
  0xcc   :  { %v245_v42 = vpop.trf.xlu1 }
  0xcd   :  { %v213_v17 = vpop.trf.xlu0 }
  0xd0   :  { %v246_v44 = vpop.trf.xlu1 }
  0xd1   :  { %v214_v18 = vpop.trf.xlu0 }
  0xd4   :  { %v247_v46 = vpop.trf.xlu1 }
  0xd5   :  { %v215_v19 = vpop.trf.xlu0 }
  0xd8   :  { %v248_v48 = vpop.trf.xlu1 }
  0xd9   :  { %v216_v25 = vpop.trf.xlu0 }
  0xdc   :  { %v249_v50 = vpop.trf.xlu1 }
  0xdd   :  { %v217_v29 = vpop.trf.xlu0 }
  0xe0   :  { %v250_v52 = vpop.trf.xlu1 }
  0xe1   :  { %v218_v36 = vpop.trf.xlu0 }
  0xe4   :  { %v251_v53 = vpop.trf.xlu1 }
  0xe5   :  { %v219_v37 = vpop.trf.xlu0 }
  0xe8   :  { %v252_v54 = vpop.trf.xlu1 }
  0xe9   :  { %v220_v38 = vpop.trf.xlu0 }
  0xec   :  { %v253_v55 = vpop.trf.xlu1 }
  0xed   :  { %v221_v39 = vpop.trf.xlu0 }
  0xf0   :  { %v254_v58 = vpop.trf.xlu1 }
  0xf1   :  { %v222_v40 = vpop.trf.xlu0 }
  0xf4   :  { %v255_v61 = vpop.trf.xlu1 }
  0xf5   :  { %v223_v41 = vpop.trf.xlu0 }
  0xf8   :  { %v256_v63 = vpop.trf.xlu1 }
  0xf9   :  { %v224_v43 = vpop.trf.xlu0 }
  0xfc   :  { %v257_v1 = vpop.trf.xlu1 }
  0xfd   :  { %v225_v45 = vpop.trf.xlu0 }
 0x100   :  { %v258_v2 = vpop.trf.xlu1 }
 0x101   :  { %v226_v47 = vpop.trf.xlu0 }
 0x104   :  { %v259_v3 = vpop.trf.xlu1 }
 0x105   :  { %v227_v49 = vpop.trf.xlu0 }
 0x108   :  { %v260_v4 = vpop.trf.xlu1 }
 0x109   :  { %v228_v51 = vpop.trf.xlu0 }
 0x129   :  { %v174_v20 = vpop.f32.mrb[0].mxu1 }
 0x12a   :  { %v176_v21 = vpop.f32.mrb[1].mxu1 }
 0x12d   :  { %v180_v22 = vpop.f32.mrb[2].mxu1 }
 0x12e   :  { %v2331_v23 = vpack.c.bf16 %v180_v22, %v174_v20  ;;  %v182_v24 = vpop.f32.mrb[3].mxu1 }
 0x12f   :  { %v2329_v26 = vpack.c.bf16 %v182_v24, %v176_v21 }
 0x131   :  { %v186_v27 = vpop.f32.mrb[4].mxu1  ;;  %2330 = vmatprep.subr.bf16.mxu1 %v2329_v26 }
 0x132   :  { %v188_v28 = vpop.f32.mrb[5].mxu1  ;;  %2332 = vmatpush1.bf16.msra.mxu1 %v2331_v23 }
 0x135   :  { %v192_v30 = vpop.f32.mrb[6].mxu1 }
 0x136   :  { %v2335_v31 = vpack.c.bf16 %v192_v30, %v186_v27  ;;  %v194_v32 = vpop.f32.mrb[7].mxu1 }
 0x137   :  { %v2333_v33 = vpack.c.bf16 %v194_v32, %v188_v28 }
 0x139   :  { %2334 = vmatprep.subr.bf16.mxu1 %v2333_v33 }
 0x13a   :  { %2336 = vmatpush1.bf16.msra.mxu1 %v2335_v31 }
 0x13d   :  { %2239 = vmatmul.mubr.msk.f32.vlgmr.msra.gmra.mrb[8].mxu1 %vm95_vm0, %v213_v17 }
 0x13e   :  { %427 = vmatprep.mubr.f32.mxu1 %v4541_v0 }
 0x141   :  { %2240 = vmatmul.mubr.msk.f32.gmra.mrb[10].mxu1 %vm95_vm0, %v214_v18 }
 0x142   :  { %433 = vmatprep.mubr.f32.mxu1 %v4541_v0 }
 0x145   :  { %2241 = vmatmul.mubr.msk.f32.gmra.mrb[12].mxu1 %vm95_vm0, %v215_v19 }
 0x146   :  { %439 = vmatprep.mubr.f32.mxu1 %v4541_v0 }
 0x149   :  { %2242 = vmatmul.mubr.msk.f32.gmra.mrb[14].mxu1 %vm95_vm0, %v216_v25 }
 0x14a   :  { %445 = vmatprep.mubr.f32.mxu1 %v4541_v0 }
 0x14d   :  { %2243 = vmatmul.mubr.msk.f32.gmra.mrb[16].mxu1 %vm95_vm0, %v217_v29 }
 0x14e   :  { %451 = vmatprep.mubr.f32.mxu1 %v4541_v0 }
 0x151   :  { %2244 = vmatmul.mubr.msk.f32.gmra.mrb[18].mxu1 %vm95_vm0, %v218_v36 }
 0x152   :  { %457 = vmatprep.mubr.f32.mxu1 %v4541_v0 }
 0x155   :  { %2245 = vmatmul.mubr.msk.f32.gmra.mrb[20].mxu1 %vm95_vm0, %v219_v37 }
 0x156   :  { %463 = vmatprep.mubr.f32.mxu1 %v4541_v0 }
 0x159   :  { %2246 = vmatmul.mubr.msk.f32.gmra.mrb[22].mxu1 %vm95_vm0, %v220_v38 }
 0x15a   :  { %469 = vmatprep.mubr.f32.mxu1 %v4541_v0 }
 0x15d   :  { %2247 = vmatmul.mubr.msk.f32.gmra.mrb[24].mxu1 %vm95_vm0, %v221_v39 }
 0x15e   :  { %475 = vmatprep.mubr.f32.mxu1 %v4541_v0 }
 0x161   :  { %2248 = vmatmul.mubr.msk.f32.gmra.mrb[26].mxu1 %vm95_vm0, %v222_v40 }
 0x162   :  { %481 = vmatprep.mubr.f32.mxu1 %v4541_v0 }
 0x165   :  { %2249 = vmatmul.mubr.msk.f32.gmra.mrb[28].mxu1 %vm95_vm0, %v223_v41 }
 0x166   :  { %487 = vmatprep.mubr.f32.mxu1 %v4541_v0 }
 0x169   :  { %2250 = vmatmul.mubr.msk.f32.gmra.mrb[30].mxu1 %vm95_vm0, %v224_v43 }
 0x16a   :  { %493 = vmatprep.mubr.f32.mxu1 %v4541_v0 }
 0x16d   :  { %2251 = vmatmul.mubr.msk.f32.gmra.mrb[32].mxu1 %vm95_vm0, %v225_v45 }
 0x16e   :  { %499 = vmatprep.mubr.f32.mxu1 %v4541_v0 }
 0x171   :  { %2252 = vmatmul.mubr.msk.f32.gmra.mrb[34].mxu1 %vm95_vm0, %v226_v47 }
 0x172   :  { %505 = vmatprep.mubr.f32.mxu1 %v4541_v0 }
 0x175   :  { %2253 = vmatmul.mubr.msk.f32.gmra.mrb[36].mxu1 %vm95_vm0, %v227_v49 }
 0x176   :  { %511 = vmatprep.mubr.f32.mxu1 %v4541_v0 }
 0x179   :  { %2254 = vmatmul.mubr.msk.f32.gmra.mrb[38].mxu1 %vm95_vm0, %v228_v51 }
 0x17a   :  { %517 = vmatprep.mubr.f32.mxu1 %v4541_v0 }
 0x17d   :  { %2255 = vmatmul.mubr.msk.f32.gmra.mrb[40].mxu1 %vm95_vm0, %v245_v42 }
 0x17e   :  { %523 = vmatprep.mubr.f32.mxu1 %v4541_v0 }
 0x181   :  { %2256 = vmatmul.mubr.msk.f32.gmra.mrb[42].mxu1 %vm95_vm0, %v246_v44 }
 0x182   :  { %529 = vmatprep.mubr.f32.mxu1 %v4541_v0 }
 0x185   :  { %2257 = vmatmul.mubr.msk.f32.gmra.mrb[44].mxu1 %vm95_vm0, %v247_v46 }
 0x186   :  { %535 = vmatprep.mubr.f32.mxu1 %v4541_v0 }
 0x189   :  { %2258 = vmatmul.mubr.msk.f32.gmra.mrb[46].mxu1 %vm95_vm0, %v248_v48 }
 0x18a   :  { %541 = vmatprep.mubr.f32.mxu1 %v4541_v0 }
 0x18d   :  { %2259 = vmatmul.mubr.msk.f32.gmra.mrb[48].mxu1 %vm95_vm0, %v249_v50 }
 0x18e   :  { %547 = vmatprep.mubr.f32.mxu1 %v4541_v0 }
 0x191   :  { %2260 = vmatmul.mubr.msk.f32.gmra.mrb[50].mxu1 %vm95_vm0, %v250_v52 }
 0x192   :  { %553 = vmatprep.mubr.f32.mxu1 %v4541_v0 }
 0x195   :  { %2261 = vmatmul.mubr.msk.f32.gmra.mrb[52].mxu1 %vm95_vm0, %v251_v53 }
 0x196   :  { %559 = vmatprep.mubr.f32.mxu1 %v4541_v0 }
 0x199   :  { %2262 = vmatmul.mubr.msk.f32.gmra.mrb[54].mxu1 %vm95_vm0, %v252_v54 }
 0x19a   :  { %565 = vmatprep.mubr.f32.mxu1 %v4541_v0 }
 0x19d   :  { %2263 = vmatmul.mubr.msk.f32.gmra.mrb[56].mxu1 %vm95_vm0, %v253_v55 }
 0x19e   :  { %571 = vmatprep.mubr.f32.mxu1 %v4541_v0 }
 0x1a1   :  { %2264 = vmatmul.mubr.msk.f32.gmra.mrb[58].mxu1 %vm95_vm0, %v254_v58 }
 0x1a2   :  { %577 = vmatprep.mubr.f32.mxu1 %v4541_v0 }
 0x1a5   :  { %2265 = vmatmul.mubr.msk.f32.gmra.mrb[60].mxu1 %vm95_vm0, %v255_v61 }
 0x1a6   :  { %583 = vmatprep.mubr.f32.mxu1 %v4541_v0 }
 0x1a9   :  { %2266 = vmatmul.mubr.msk.f32.gmra.mrb[62].mxu1 %vm95_vm0, %v256_v63 }
 0x1aa   :  { %589 = vmatprep.mubr.f32.mxu1 %v4541_v0 }
 0x1ad   :  { %2267 = vmatmul.mubr.msk.f32.gmra.mrb[64].mxu1 %vm95_vm0, %v257_v1 }
 0x1ae   :  { %595 = vmatprep.mubr.f32.mxu1 %v4541_v0 }
 0x1b1   :  { %2268 = vmatmul.mubr.msk.f32.gmra.mrb[66].mxu1 %vm95_vm0, %v258_v2 }
 0x1b2   :  { %601 = vmatprep.mubr.f32.mxu1 %v4541_v0 }
 0x1b5   :  { %2269 = vmatmul.mubr.msk.f32.gmra.mrb[68].mxu1 %vm95_vm0, %v259_v3 }
 0x1b6   :  { %607 = vmatprep.mubr.f32.mxu1 %v4541_v0 }
 0x1b9   :  { %2270 = vmatmul.mubr.msk.f32.gmra.mrb[70].mxu1 %vm95_vm0, %v260_v4 }
 0x1ba   :  { %2077 = vmatprep.mubr.bf16.mxu1 %v4540_v60 }
 0x210   :  { %v3096_v5 = vpop.f32.mrb[8].mxu1 }
 0x211   :  { %v3098_v6 = vpop.f32.mrb[9].mxu1 }
 0x214   :  { %v3100_v7 = vpop.f32.mrb[10].mxu1 }
 0x215   :  { %v3102_v8 = vpop.f32.mrb[11].mxu1 }
 0x218   :  { %v3104_v9 = vpop.f32.mrb[12].mxu1 }
 0x219   :  { %v614_v10 = vmax.f32 %v3096_v5, %v3104_v9  ;;  %v3108_v11 = vpop.f32.mrb[13].mxu1 }
 0x21a   :  { %v651_v12 = vmax.f32 %v3098_v6, %v3108_v11 }
 0x21c   :  { %v3112_v13 = vpop.f32.mrb[14].mxu1 }
 0x21d   :  { %v615_v14 = vmax.f32 %v3100_v7, %v3112_v13  ;;  %v3116_v15 = vpop.f32.mrb[15].mxu1 }
 0x21e   :  { %v652_v16 = vmax.f32 %v3102_v8, %v3116_v15 }
 0x220   :  { %v3120_v17 = vpop.f32.mrb[16].mxu1 }
 0x221   :  { %v616_v18 = vmax.f32 %v614_v10, %v3120_v17  ;;  %v3123_v19 = vpop.f32.mrb[17].mxu1 }
 0x222   :  { %v653_v20 = vmax.f32 %v651_v12, %v3123_v19 }
 0x224   :  { %v3126_v21 = vpop.f32.mrb[18].mxu1 }
 0x225   :  { %v617_v22 = vmax.f32 %v615_v14, %v3126_v21  ;;  %v3129_v23 = vpop.f32.mrb[19].mxu1 }
 0x226   :  { %v654_v24 = vmax.f32 %v652_v16, %v3129_v23 }
 0x228   :  { %v3132_v25 = vpop.f32.mrb[20].mxu1 }
 0x229   :  { %v618_v26 = vmax.f32 %v616_v18, %v3132_v25  ;;  %v3135_v27 = vpop.f32.mrb[21].mxu1 }
 0x22a   :  { %v655_v28 = vmax.f32 %v653_v20, %v3135_v27 }
 0x22c   :  { %v3138_v29 = vpop.f32.mrb[22].mxu1 }
 0x22d   :  { %v619_v30 = vmax.f32 %v617_v22, %v3138_v29  ;;  %v3141_v31 = vpop.f32.mrb[23].mxu1 }
 0x22e   :  { %v656_v32 = vmax.f32 %v654_v24, %v3141_v31 }
 0x230   :  { %v3144_v33 = vpop.f32.mrb[24].mxu1 }
 0x231   :  { %v620_v34 = vmax.f32 %v618_v26, %v3144_v33  ;;  %v3147_v35 = vpop.f32.mrb[25].mxu1 }
 0x232   :  { %v657_v36 = vmax.f32 %v655_v28, %v3147_v35 }
 0x234   :  { %v3150_v37 = vpop.f32.mrb[26].mxu1 }
 0x235   :  { %v621_v38 = vmax.f32 %v619_v30, %v3150_v37  ;;  %v3153_v39 = vpop.f32.mrb[27].mxu1 }
 0x236   :  { %v658_v40 = vmax.f32 %v656_v32, %v3153_v39 }
 0x238   :  { %v3156_v41 = vpop.f32.mrb[28].mxu1 }
 0x239   :  { %v622_v42 = vmax.f32 %v620_v34, %v3156_v41  ;;  %v3159_v43 = vpop.f32.mrb[29].mxu1 }
 0x23a   :  { %4639 = vst [vmem:[#allocation16_spill] sm:$0xff] %v3159_v43  ;;  %v659_v44 = vmax.f32 %v657_v36, %v3159_v43  ;;  %v3294_v43 = vld [vmem:[#allocation3 + $0x40] sm:$0xff] }
 0x23b   :  { %4663 = vst [vmem:[#allocation40_spill] sm:$0xff] %v3294_v43  ;;  %1263 = vxpose.xlu0.b32.start [1/4] (short) %v3294_v43, 128 }
 0x23c   :  { %v3162_v45 = vpop.f32.mrb[30].mxu1 }
 0x23d   :  { %v623_v46 = vmax.f32 %v621_v38, %v3162_v45  ;;  %v3165_v47 = vpop.f32.mrb[31].mxu1 }
 0x23e   :  { %4640 = vst [vmem:[#allocation17_spill] sm:$0xff] %v3165_v47  ;;  %v660_v48 = vmax.f32 %v658_v40, %v3165_v47  ;;  %v3290_v47 = vpop.f32.mrb[0].mxu0 }
 0x23f   :  { %4661 = vst [vmem:[#allocation38_spill] sm:$0xff] %v3290_v47 }
 0x240   :  { %v3168_v49 = vpop.f32.mrb[32].mxu1 }
 0x241   :  { %v624_v50 = vmax.f32 %v622_v42, %v3168_v49  ;;  %v3171_v51 = vpop.f32.mrb[33].mxu1 }
 0x242   :  { %4641 = vst [vmem:[#allocation18_spill] sm:$0xff] %v3171_v51  ;;  %v661_v52 = vmax.f32 %v659_v44, %v3171_v51 }
 0x244   :  { %v3174_v53 = vpop.f32.mrb[34].mxu1 }
 0x245   :  { %v625_v54 = vmax.f32 %v623_v46, %v3174_v53  ;;  %v3177_v55 = vpop.f32.mrb[35].mxu1 }
 0x246   :  { %4642 = vst [vmem:[#allocation19_spill] sm:$0xff] %v3177_v55  ;;  %v662_v56 = vmax.f32 %v660_v48, %v3177_v55 }
 0x248   :  { %v3180_v57 = vpop.f32.mrb[36].mxu1 }
 0x249   :  { %v626_v58 = vmax.f32 %v624_v50, %v3180_v57  ;;  %v3183_v59 = vpop.f32.mrb[37].mxu1 }
 0x24a   :  { %4643 = vst [vmem:[#allocation20_spill] sm:$0xff] %v3183_v59  ;;  %v663_v61 = vmax.f32 %v661_v52, %v3183_v59 }
 0x24c   :  { %v3186_v62 = vpop.f32.mrb[38].mxu1 }
 0x24d   :  { %v627_v63 = vmax.f32 %v625_v54, %v3186_v62  ;;  %v3189_v1 = vpop.f32.mrb[39].mxu1 }
 0x24e   :  { %4644 = vst [vmem:[#allocation21_spill] sm:$0xff] %v3189_v1  ;;  %v664_v2 = vmax.f32 %v662_v56, %v3189_v1 }
 0x250   :  { %v3192_v3 = vpop.f32.mrb[40].mxu1 }
 0x251   :  { %v628_v4 = vmax.f32 %v626_v58, %v3192_v3  ;;  %v3195_v10 = vpop.f32.mrb[41].mxu1 }
 0x252   :  { %4645 = vst [vmem:[#allocation22_spill] sm:$0xff] %v3195_v10  ;;  %v665_v12 = vmax.f32 %v663_v61, %v3195_v10 }
 0x254   :  { %v3198_v14 = vpop.f32.mrb[42].mxu1 }
 0x255   :  { %v629_v16 = vmax.f32 %v627_v63, %v3198_v14  ;;  %v3201_v18 = vpop.f32.mrb[43].mxu1 }
 0x256   :  { %4646 = vst [vmem:[#allocation23_spill] sm:$0xff] %v3201_v18  ;;  %v666_v20 = vmax.f32 %v664_v2, %v3201_v18 }
 0x258   :  { %v3204_v22 = vpop.f32.mrb[44].mxu1 }
 0x259   :  { %v630_v24 = vmax.f32 %v628_v4, %v3204_v22  ;;  %v3207_v26 = vpop.f32.mrb[45].mxu1 }
 0x25a   :  { %4647 = vst [vmem:[#allocation24_spill] sm:$0xff] %v3207_v26  ;;  %v667_v28 = vmax.f32 %v665_v12, %v3207_v26 }
 0x25c   :  { %v3210_v30 = vpop.f32.mrb[46].mxu1 }
 0x25d   :  { %v631_v32 = vmax.f32 %v629_v16, %v3210_v30  ;;  %v3213_v34 = vpop.f32.mrb[47].mxu1 }
 0x25e   :  { %4648 = vst [vmem:[#allocation25_spill] sm:$0xff] %v3213_v34  ;;  %v668_v36 = vmax.f32 %v666_v20, %v3213_v34 }
 0x260   :  { %v3216_v38 = vpop.f32.mrb[48].mxu1 }
 0x261   :  { %v632_v40 = vmax.f32 %v630_v24, %v3216_v38  ;;  %v3219_v42 = vpop.f32.mrb[49].mxu1 }
 0x262   :  { %4649 = vst [vmem:[#allocation26_spill] sm:$0xff] %v3219_v42  ;;  %v669_v44 = vmax.f32 %v667_v28, %v3219_v42 }
 0x264   :  { %v3222_v46 = vpop.f32.mrb[50].mxu1 }
 0x265   :  { %v633_v48 = vmax.f32 %v631_v32, %v3222_v46  ;;  %v3225_v50 = vpop.f32.mrb[51].mxu1 }
 0x266   :  { %4650 = vst [vmem:[#allocation27_spill] sm:$0xff] %v3225_v50  ;;  %v670_v52 = vmax.f32 %v668_v36, %v3225_v50 }
 0x268   :  { %v3228_v54 = vpop.f32.mrb[52].mxu1 }
 0x269   :  { %v634_v56 = vmax.f32 %v632_v40, %v3228_v54  ;;  %v3231_v58 = vpop.f32.mrb[53].mxu1 }
 0x26a   :  { %4651 = vst [vmem:[#allocation28_spill] sm:$0xff] %v3231_v58  ;;  %v671_v61 = vmax.f32 %v669_v44, %v3231_v58 }
 0x26c   :  { %v3234_v63 = vpop.f32.mrb[54].mxu1 }
 0x26d   :  { %v635_v2 = vmax.f32 %v633_v48, %v3234_v63  ;;  %v3237_v4 = vpop.f32.mrb[55].mxu1 }
 0x26e   :  { %4652 = vst [vmem:[#allocation29_spill] sm:$0xff] %v3237_v4  ;;  %v672_v12 = vmax.f32 %v670_v52, %v3237_v4 }
 0x270   :  { %v3240_v16 = vpop.f32.mrb[56].mxu1 }
 0x271   :  { %v636_v20 = vmax.f32 %v634_v56, %v3240_v16  ;;  %v3243_v24 = vpop.f32.mrb[57].mxu1 }
 0x272   :  { %4653 = vst [vmem:[#allocation30_spill] sm:$0xff] %v3243_v24  ;;  %v673_v28 = vmax.f32 %v671_v61, %v3243_v24 }
 0x274   :  { %v3246_v32 = vpop.f32.mrb[58].mxu1 }
 0x275   :  { %v637_v36 = vmax.f32 %v635_v2, %v3246_v32  ;;  %v3249_v40 = vpop.f32.mrb[59].mxu1 }
 0x276   :  { %4654 = vst [vmem:[#allocation31_spill] sm:$0xff] %v3249_v40  ;;  %v674_v44 = vmax.f32 %v672_v12, %v3249_v40 }
 0x278   :  { %v3252_v48 = vpop.f32.mrb[60].mxu1 }
 0x279   :  { %v638_v52 = vmax.f32 %v636_v20, %v3252_v48  ;;  %v3255_v60 = vpop.f32.mrb[61].mxu1 }
 0x27a   :  { %4655 = vst [vmem:[#allocation32_spill] sm:$0xff] %v3255_v60  ;;  %v675_v56 = vmax.f32 %v673_v28, %v3255_v60 }
 0x27c   :  { %v3258_v0 = vpop.f32.mrb[62].mxu1 }
 0x27d   :  { %v639_v61 = vmax.f32 %v637_v36, %v3258_v0  ;;  %v3261_v24 = vpop.f32.mrb[63].mxu1 }
 0x27e   :  { %4656 = vst [vmem:[#allocation33_spill] sm:$0xff] %v3261_v24  ;;  %v676_v2 = vmax.f32 %v674_v44, %v3261_v24 }
 0x280   :  { %v3264_v4 = vpop.f32.mrb[64].mxu1 }
 0x281   :  { %v640_v12 = vmax.f32 %v638_v52, %v3264_v4  ;;  %v3267_v40 = vpop.f32.mrb[65].mxu1 }
 0x282   :  { %4657 = vst [vmem:[#allocation34_spill] sm:$0xff] %v3267_v40  ;;  %v677_v20 = vmax.f32 %v675_v56, %v3267_v40 }
 0x284   :  { %v3270_v58 = vpop.f32.mrb[66].mxu1 }
 0x285   :  { %v641_v28 = vmax.f32 %v639_v61, %v3270_v58  ;;  %v3273_v60 = vpop.f32.mrb[67].mxu1 }
 0x286   :  { %4658 = vst [vmem:[#allocation35_spill] sm:$0xff] %v3273_v60  ;;  %v678_v36 = vmax.f32 %v676_v2, %v3273_v60 }
 0x288   :  { %v3276_v50 = vpop.f32.mrb[68].mxu1 }
 0x289   :  { %v642_v44 = vmax.f32 %v640_v12, %v3276_v50  ;;  %v3279_v24 = vpop.f32.mrb[69].mxu1 }
 0x28a   :  { %4659 = vst [vmem:[#allocation36_spill] sm:$0xff] %v3279_v24  ;;  %v679_v52 = vmax.f32 %v677_v20, %v3279_v24 }
 0x28c   :  { %v3282_v42 = vpop.f32.mrb[70].mxu1 }
 0x28d   :  { %v643_v56 = vmax.f32 %v641_v28, %v3282_v42  ;;  %v3285_v40 = vpop.f32.mrb[71].mxu1  ;;  %v3292_v28 = vld [vmem:[#allocation3 + $0x48] sm:$0xff] }
 0x28e   :  { %4660 = vst [vmem:[#allocation37_spill] sm:$0xff] %v3285_v40  ;;  %v680_v61 = vmax.f32 %v678_v36, %v3285_v40  ;;  %4662 = vst [vmem:[#allocation39_spill] sm:$0xff] %v3292_v28  ;;  %1295 = vxpose.xlu1.b32.start [1/4] (short) %v3292_v28, 128 }
 0x28f   :  { %v644_v34 = vmax.f32 %v642_v44, %v643_v56  ;;  %v1030_v44 = vpop.f32.mrb[1].mxu0  ;;  %v3342_v56 = vld [vmem:[#allocation3 + $0x58] sm:$0xff] }
 0x290   :  { %v681_v26 = vmax.f32 %v679_v52, %v680_v61  ;;  %1111 = vmatprep.mubr.f32.mxu0 %v1030_v44  ;;  %4669 = vst [vmem:[#allocation46_spill] sm:$0xff] %v3342_v56 }
 0x291   :  { %v645_v18 = vrot.slane %v644_v34, 4  ;;  %v4696_v28 = vld [vmem:[#allocation36_spill] sm:$0xff] }
 0x292   :  { %v682_v2 = vrot.slane %v681_v26, 4  ;;  %1296 = vxpose.xlu1.b32.cont [2/4] (short) %v3342_v56, 128 }
 0x293   :  { %v646_v60 = vmax.f32 %v644_v34, %v645_v18 }
 0x294   :  { %v683_v10 = vmax.f32 %v681_v26, %v682_v2 }
 0x295   :  { %v647_v1 = vrot.slane %v646_v60, 2 }
 0x296   :  { %v684_v12 = vrot.slane %v683_v10, 2 }
 0x297   :  { %v648_v59 = vmax.f32 %v646_v60, %v647_v1 }
 0x298   :  { %v685_v55 = vmax.f32 %v683_v10, %v684_v12  ;;  %v3308_v10 = vpop.f32.mrb[2].mxu0 }
 0x299   :  { %v649_v51 = vrot.slane %v648_v59, 1  ;;  %4664 = vst [vmem:[#allocation41_spill] sm:$0xff] %v3308_v10  ;;  %v3318_v26 = vpop.f32.mrb[3].mxu0 }
 0x29a   :  { %v686_v20 = vrot.slane %v685_v55, 1  ;;  %4665 = vst [vmem:[#allocation42_spill] sm:$0xff] %v3318_v26  ;;  %v3328_v34 = vpop.f32.mrb[4].mxu0 }
 0x29b   :  { %v3288_v24 = vmax.f32 %v648_v59, %v649_v51  ;;  %4666 = vst [vmem:[#allocation43_spill] sm:$0xff] %v3328_v34  ;;  %v3392_v34 = vld [vmem:[#allocation3 + $0x70] sm:$0xff] }
 0x29c   :  { %v3296_v36 = vmax.f32 %v685_v55, %v686_v20  ;;  %v3374_v20 = vld [vmem:[#allocation3 + $0x60] sm:$0xff]  ;;  %4674 = vst [vmem:[#allocation51_spill] sm:$0xff] %v3392_v34 }
 0x29d   :  { %v688_v60 = vsub.f32 %v3096_v5, %v3288_v24  ;;  %v690_v51 = vsub.f32 %v3100_v7, %v3288_v24  ;;  %v692_v59 = vsub.f32 %v3104_v9, %v3288_v24  ;;  %v694_v1 = vsub.f32 %v3112_v13, %v3288_v24  ;;  %4672 = vst [vmem:[#allocation49_spill] sm:$0xff] %v3374_v20 }
 0x29e   :  { %v696_v55 = vsub.f32 %v3120_v17, %v3288_v24  ;;  %v698_v18 = vsub.f32 %v3126_v21, %v3288_v24  ;;  %v700_v5 = vsub.f32 %v3132_v25, %v3288_v24  ;;  %v702_v7 = vsub.f32 %v3138_v29, %v3288_v24  ;;  %v3330_v25 = vld [vmem:[#allocation3 + $0x50] sm:$0xff] }
 0x29f   :  { %v704_v9 = vsub.f32 %v3144_v33, %v3288_v24  ;;  %v706_v13 = vsub.f32 %v3150_v37, %v3288_v24  ;;  %v708_v17 = vsub.f32 %v3156_v41, %v3288_v24  ;;  %v710_v21 = vsub.f32 %v3162_v45, %v3288_v24  ;;  %4667 = vst [vmem:[#allocation44_spill] sm:$0xff] %v3330_v25  ;;  %v3340_v41 = vpop.f32.mrb[5].mxu0 }
 0x2a0   :  { %v712_v29 = vsub.f32 %v3168_v49, %v3288_v24  ;;  %v714_v52 = vsub.f32 %v3174_v53, %v3288_v24  ;;  %v716_v33 = vsub.f32 %v3180_v57, %v3288_v24  ;;  %v718_v37 = vsub.f32 %v3186_v62, %v3288_v24  ;;  %4668 = vst [vmem:[#allocation45_spill] sm:$0xff] %v3340_v41  ;;  %v3353_v61 = vpop.f32.mrb[6].mxu0  ;;  %v3394_v41 = vld [vmem:[#allocation3 + $0x78] sm:$0xff] }
 0x2a1   :  { %1264 = vxpose.xlu0.b32.cont [2/4] (short) %v3330_v25, 128  ;;  %v720_v45 = vsub.f32 %v3192_v3, %v3288_v24  ;;  %v722_v49 = vsub.f32 %v3198_v14, %v3288_v24  ;;  %v724_v53 = vsub.f32 %v3204_v22, %v3288_v24  ;;  %v726_v57 = vsub.f32 %v3210_v30, %v3288_v24  ;;  %v3364_v22 = vpop.f32.mrb[7].mxu0  ;;  %v3384_v30 = vld [vmem:[#allocation3 + $0x68] sm:$0xff] }
 0x2a2   :  { %4670 = vst [vmem:[#allocation47_spill] sm:$0xff] %v3353_v61  ;;  %v728_v62 = vsub.f32 %v3216_v38, %v3288_v24  ;;  %v730_v2 = vsub.f32 %v3222_v46, %v3288_v24  ;;  %v732_v3 = vsub.f32 %v3228_v54, %v3288_v24  ;;  %v734_v14 = vsub.f32 %v3234_v63, %v3288_v24 }
 0x2a3   :  { %4671 = vst [vmem:[#allocation48_spill] sm:$0xff] %v3364_v22  ;;  %4673 = vst [vmem:[#allocation50_spill] sm:$0xff] %v3384_v30  ;;  %v752_v38 = vmul.f32 1.442695, %v688_v60  ;;  %v756_v46 = vmul.f32 1.442695, %v690_v51  ;;  %1297 = vxpose.xlu1.b32.cont [3/4] (short) %v3384_v30, 128 }
 0x2a4   :  { %v760_v61 = vmul.f32 1.442695, %v692_v59  ;;  %v764_v54 = vmul.f32 1.442695, %v694_v1  ;;  %v768_v44 = vmul.f32 1.442695, %v696_v55 }
 0x2a5   :  { %1265 = vxpose.xlu0.b32.cont [3/4] (short) %v3374_v20, 128  ;;  %2508 = vpow2.f32 %v752_v38  ;;  %v772_v12 = vmul.f32 1.442695, %v698_v18  ;;  %4675 = vst [vmem:[#allocation52_spill] sm:$0xff] %v3394_v41  ;;  %v776_v60 = vmul.f32 1.442695, %v700_v5 }
 0x2a6   :  { %2510 = vpow2.f32 %v756_v46  ;;  %v780_v51 = vmul.f32 1.442695, %v702_v7  ;;  %v784_v59 = vmul.f32 1.442695, %v704_v9  ;;  %v788_v1 = vmul.f32 1.442695, %v706_v13 }
 0x2a7   :  { %2512 = vpow2.f32 %v760_v61  ;;  %1298 = vxpose.xlu1.b32.end [4/4] (short) %v3394_v41, 128  ;;  %v792_v63 = vmul.f32 1.442695, %v708_v17  ;;  %v796_v38 = vmul.f32 1.442695, %v710_v21  ;;  %v800_v55 = vmul.f32 1.442695, %v712_v29 }
 0x2a8   :  { %2514 = vpow2.f32 %v764_v54  ;;  %v804_v22 = vmul.f32 1.442695, %v714_v52  ;;  %v808_v46 = vmul.f32 1.442695, %v716_v33  ;;  %v812_v18 = vmul.f32 1.442695, %v718_v37 }
 0x2a9   :  { %1266 = vxpose.xlu0.b32.end [4/4] (short) %v3392_v34, 128  ;;  %2516 = vpow2.f32 %v768_v44  ;;  %v816_v10 = vmul.f32 1.442695, %v720_v45  ;;  %v820_v20 = vmul.f32 1.442695, %v722_v49  ;;  %v824_v34 = vmul.f32 1.442695, %v724_v53 }
 0x2aa   :  { %2518 = vpow2.f32 %v772_v12  ;;  %v828_v5 = vmul.f32 1.442695, %v726_v57  ;;  %v832_v61 = vmul.f32 1.442695, %v728_v62  ;;  %v3398_v26 = vmul.f32 1.442695, %v730_v2 }
 0x2ab   :  { %2520 = vpow2.f32 %v776_v60  ;;  %v3400_v7 = vmul.f32 1.442695, %v732_v3  ;;  %v3402_v9 = vmul.f32 1.442695, %v734_v14  ;;  %v4676_v57 = vld [vmem:[#allocation16_spill] sm:$0xff]  ;;  %v4677_v2 = vld [vmem:[#allocation17_spill] sm:$0xff] }
 0x2ac   :  { %2522 = vpow2.f32 %v780_v51  ;;  %v4678_v54 = vld [vmem:[#allocation18_spill] sm:$0xff]  ;;  %v4679_v44 = vld [vmem:[#allocation19_spill] sm:$0xff]  ;;  %v4684_v37 = vld [vmem:[#allocation24_spill] sm:$0xff] }
 0x2ad   :  { %2524 = vpow2.f32 %v784_v59  ;;  %v4680_v59 = vld [vmem:[#allocation20_spill] sm:$0xff]  ;;  %v4683_v45 = vld [vmem:[#allocation23_spill] sm:$0xff]  ;;  %v4686_v29 = vld [vmem:[#allocation26_spill] sm:$0xff] }
 0x2ae   :  { %2526 = vpow2.f32 %v788_v1  ;;  %v4685_v1 = vld [vmem:[#allocation25_spill] sm:$0xff]  ;;  %v4687_v21 = vld [vmem:[#allocation27_spill] sm:$0xff]  ;;  %v4688_v60 = vld [vmem:[#allocation28_spill] sm:$0xff] }
 0x2af   :  { %v3412_v52 = vpop.eup %2508  ;;  %2528 = vpow2.f32 %v792_v63  ;;  %v4689_v13 = vld [vmem:[#allocation29_spill] sm:$0xff]  ;;  %v4690_v3 = vld [vmem:[#allocation30_spill] sm:$0xff]  ;;  %v4691_v41 = vld [vmem:[#allocation31_spill] sm:$0xff] }
 0x2b0   :  { %v3420_v49 = vpop.eup %2510  ;;  %2530 = vpow2.f32 %v796_v38  ;;  %v4681_v38 = vld [vmem:[#allocation21_spill] sm:$0xff]  ;;  %v4695_v62 = vld [vmem:[#allocation35_spill] sm:$0xff] }
 0x2b1   :  { %v3428_v14 = vpop.eup %2512  ;;  %2532 = vpow2.f32 %v800_v55  ;;  %v880_v12 = vadd.f32 %v3420_v49, %v3412_v52  ;;  %v4682_v55 = vld [vmem:[#allocation22_spill] sm:$0xff] }
 0x2b2   :  { %v3436_v51 = vpop.eup %2514  ;;  %2534 = vpow2.f32 %v804_v22  ;;  %v4693_v22 = vld [vmem:[#allocation33_spill] sm:$0xff] }
 0x2b3   :  { %v3444_v53 = vpop.eup %2516  ;;  %2536 = vpow2.f32 %v808_v46  ;;  %v881_v63 = vadd.f32 %v3428_v14, %v880_v12 }
 0x2b4   :  { %v3451_v33 = vpop.eup %2518  ;;  %2538 = vpow2.f32 %v812_v18 }
 0x2b5   :  { %v3459_v17 = vpop.eup %2520  ;;  %2540 = vpow2.f32 %v816_v10  ;;  %v882_v12 = vadd.f32 %v3436_v51, %v881_v63 }
 0x2b6   :  { %v3466_v47 = vpop.eup %2522  ;;  %2542 = vpow2.f32 %v820_v20 }
 0x2b7   :  { %v3474_v25 = vpop.eup %2524  ;;  %2544 = vpow2.f32 %v824_v34  ;;  %v883_v63 = vadd.f32 %v3444_v53, %v882_v12  ;;  %v4697_v12 = vsub.f32 %v3240_v16, %v3288_v24 }
 0x2b8   :  { %v3481_v56 = vpop.eup %2526  ;;  %2546 = vpow2.f32 %v828_v5  ;;  %v4698_v5 = vsub.f32 %v3246_v32, %v3288_v24 }
 0x2b9   :  { %v3489_v30 = vpop.eup %2528  ;;  %2548 = vpow2.f32 %v832_v61  ;;  %v848_v18 = vmul.f32 1.442695, %v4697_v12  ;;  %v884_v20 = vadd.f32 %v3451_v33, %v883_v63  ;;  %v4699_v61 = vsub.f32 %v3252_v48, %v3288_v24 }
 0x2ba   :  { %v3495_v43 = vpop.eup %2530  ;;  %2550 = vpow2.f32 %v3398_v26  ;;  %v852_v10 = vmul.f32 1.442695, %v4698_v5  ;;  %v4700_v26 = vsub.f32 %v3258_v0, %v3288_v24  ;;  %v4704_v0 = vsub.f32 %v3276_v50, %v3288_v24 }
 0x2bb   :  { %v3501_v46 = vpop.eup %2532  ;;  %2552 = vpow2.f32 %v3400_v7  ;;  %v856_v34 = vmul.f32 1.442695, %v4699_v61  ;;  %v885_v16 = vadd.f32 %v3459_v17, %v884_v20  ;;  %v4701_v7 = vsub.f32 %v3264_v4, %v3288_v24 }
 0x2bc   :  { %v3508_v12 = vpop.eup %2534  ;;  %2554 = vpow2.f32 %v3402_v9  ;;  %v860_v63 = vmul.f32 1.442695, %v4700_v26  ;;  %v4702_v20 = vsub.f32 %v3270_v58, %v3288_v24 }
 0x2bd   :  { %v3514_v32 = vpop.eup %2536  ;;  %2556 = vpow2.f32 %v848_v18  ;;  %v864_v5 = vmul.f32 1.442695, %v4701_v7  ;;  %v886_v48 = vadd.f32 %v3466_v47, %v885_v16  ;;  %v872_v18 = vmul.f32 1.442695, %v4704_v0 }
 0x2be   :  { %v3520_v61 = vpop.eup %2538  ;;  %2558 = vpow2.f32 %v852_v10  ;;  %v868_v9 = vmul.f32 1.442695, %v4702_v20  ;;  %v4705_v16 = vsub.f32 %v3282_v42, %v3288_v24  ;;  %v4708_v42 = vsub.f32 %v3108_v11, %v3296_v36 }
 0x2bf   :  { %v3525_v40 = vpop.eup %2540  ;;  %2560 = vpow2.f32 %v856_v34  ;;  %v887_v26 = vadd.f32 %v3474_v25, %v886_v48  ;;  %v4706_v34 = vsub.f32 %v3098_v6, %v3296_v36  ;;  %v4707_v48 = vsub.f32 %v3102_v8, %v3296_v36 }
 0x2c0   :  { %4703 = vst [vmem:[#allocation16_spill] sm:$0xff] %v3525_v40  ;;  %v3531_v4 = vpop.eup %2542  ;;  %2562 = vpow2.f32 %v860_v63  ;;  %v876_v10 = vmul.f32 1.442695, %v4705_v16  ;;  %v762_v24 = vmul.f32 1.442695, %v4708_v42  ;;  %v4709_v6 = vsub.f32 %v3116_v15, %v3296_v36 }
 0x2c1   :  { %v3536_v7 = vpop.eup %2544  ;;  %2564 = vpow2.f32 %v864_v5  ;;  %v888_v58 = vadd.f32 %v3481_v56, %v887_v26  ;;  %v754_v20 = vmul.f32 1.442695, %v4706_v34  ;;  %v758_v63 = vmul.f32 1.442695, %v4707_v48 }
 0x2c2   :  { %v3542_v50 = vpop.eup %2546  ;;  %2566 = vpow2.f32 %v868_v9  ;;  %v766_v26 = vmul.f32 1.442695, %v4709_v6  ;;  %v4710_v9 = vsub.f32 %v3123_v19, %v3296_v36  ;;  %v4711_v8 = vsub.f32 %v3129_v23, %v3296_v36 }
 0x2c3   :  { %v3550_v0 = vpop.eup %2548  ;;  %2568 = vpow2.f32 %v872_v18  ;;  %v889_v5 = vadd.f32 %v3489_v30, %v888_v58  ;;  %v4712_v18 = vsub.f32 %v3135_v27, %v3296_v36  ;;  %v4713_v58 = vsub.f32 %v3141_v31, %v3296_v36 }
 0x2c4   :  { %v770_v16 = vmul.f32 1.442695, %v4710_v9  ;;  %v3559_v34 = vpop.eup %2550  ;;  %2570 = vpow2.f32 %v876_v10  ;;  %v774_v11 = vmul.f32 1.442695, %v4711_v8  ;;  %v4714_v10 = vsub.f32 %v3147_v35, %v3296_v36 }
 0x2c5   :  { %v778_v48 = vmul.f32 1.442695, %v4712_v18  ;;  %v782_v15 = vmul.f32 1.442695, %v4713_v58  ;;  %v3570_v42 = vpop.eup %2552  ;;  %v890_v19 = vadd.f32 %v3495_v43, %v889_v5  ;;  %2572 = vpow2.f32 %v754_v20 }
 0x2c6   :  { %v786_v6 = vmul.f32 1.442695, %v4714_v10  ;;  %v4715_v23 = vsub.f32 %v3153_v39, %v3296_v36  ;;  %v3579_v8 = vpop.eup %2554  ;;  %2574 = vpow2.f32 %v758_v63 }
 0x2c7   :  { %v3587_v5 = vpop.eup %2556  ;;  %v891_v35 = vadd.f32 %v3501_v46, %v890_v19  ;;  %2576 = vpow2.f32 %v762_v24 }
 0x2c8   :  { %v790_v9 = vmul.f32 1.442695, %v4715_v23  ;;  %v3594_v18 = vpop.eup %2558  ;;  %2578 = vpow2.f32 %v766_v26  ;;  %v4716_v26 = vsub.f32 %v4676_v57, %v3296_v36  ;;  %v4717_v23 = vsub.f32 %v4677_v2, %v3296_v36 }
 0x2c9   :  { %v3602_v19 = vpop.eup %2560  ;;  %v892_v24 = vadd.f32 %v3508_v12, %v891_v35  ;;  %2580 = vpow2.f32 %v770_v16 }
 0x2ca   :  { %v3609_v39 = vpop.eup %2562  ;;  %2582 = vpow2.f32 %v774_v11  ;;  %v794_v63 = vmul.f32 1.442695, %v4716_v26  ;;  %v798_v10 = vmul.f32 1.442695, %v4717_v23 }
 0x2cb   :  { %v3617_v35 = vpop.eup %2564  ;;  %v893_v16 = vadd.f32 %v3514_v32, %v892_v24  ;;  %2584 = vpow2.f32 %v778_v48  ;;  %v4718_v48 = vsub.f32 %v4678_v54, %v3296_v36  ;;  %v4723_v54 = vsub.f32 %v4683_v45, %v3296_v36 }
 0x2cc   :  { %v3625_v20 = vpop.eup %2566  ;;  %2586 = vpow2.f32 %v782_v15  ;;  %v4719_v15 = vsub.f32 %v4679_v44, %v3296_v36  ;;  %v4722_v44 = vsub.f32 %v4682_v55, %v3296_v36  ;;  %v4726_v45 = vsub.f32 %v4686_v29, %v3296_v36 }
 0x2cd   :  { %v3630_v58 = vpop.eup %2568  ;;  %v894_v31 = vadd.f32 %v3520_v61, %v893_v16  ;;  %2588 = vpow2.f32 %v786_v6  ;;  %v802_v57 = vmul.f32 1.442695, %v4718_v48  ;;  %v4720_v6 = vsub.f32 %v4680_v59, %v3296_v36 }
 0x2ce   :  { %v3638_v26 = vpop.eup %2570  ;;  %2590 = vpow2.f32 %v790_v9  ;;  %v806_v2 = vmul.f32 1.442695, %v4719_v15  ;;  %v4721_v9 = vsub.f32 %v4681_v38, %v3296_v36  ;;  %v818_v15 = vmul.f32 1.442695, %v4722_v44 }
 0x2cf   :  { %v2573_v23 = vpop.eup %2572  ;;  %v895_v11 = vadd.f32 %v3525_v40, %v894_v31  ;;  %2592 = vpow2.f32 %v794_v63  ;;  %v810_v16 = vmul.f32 1.442695, %v4720_v6  ;;  %v4724_v38 = vsub.f32 %v4684_v37, %v3296_v36 }
 0x2d0   :  { %v2575_v48 = vpop.eup %2574  ;;  %2594 = vpow2.f32 %v798_v10  ;;  %v814_v24 = vmul.f32 1.442695, %v4721_v9  ;;  %v822_v10 = vmul.f32 1.442695, %v4723_v54  ;;  %v834_v54 = vmul.f32 1.442695, %v4726_v45 }
 0x2d1   :  { %v2577_v27 = vpop.eup %2576  ;;  %v896_v31 = vadd.f32 %v3531_v4, %v895_v11  ;;  %2596 = vpow2.f32 %v802_v57  ;;  %v917_v63 = vadd.f32 %v2575_v48, %v2573_v23  ;;  %v2337_v59 = vpack.c.bf16 %v2575_v48, %v2573_v23 }
 0x2d2   :  { %v2579_v6 = vpop.eup %2578  ;;  %2598 = vpow2.f32 %v806_v2  ;;  %v826_v9 = vmul.f32 1.442695, %v4724_v38  ;;  %v4725_v2 = vsub.f32 %v4685_v1, %v3296_v36  ;;  %v4727_v37 = vpack.c.bf16 %v3420_v49, %v3412_v52 }
 0x2d3   :  { %v2581_v40 = vpop.eup %2580  ;;  %v897_v55 = vadd.f32 %v3536_v7, %v896_v31  ;;  %2600 = vpow2.f32 %v810_v16  ;;  %v918_v44 = vadd.f32 %v2577_v27, %v917_v63  ;;  %2338 = vmatprep.subr.bf16.mxu0 %v2337_v59  ;;  %v2341_v11 = vpack.c.bf16 %v2579_v6, %v2577_v27 }
 0x2d4   :  { %v2583_v57 = vpop.eup %2582  ;;  %2602 = vpow2.f32 %v814_v24  ;;  %v830_v23 = vmul.f32 1.442695, %v4725_v2  ;;  %2340 = vmatpush1.bf16.msra.mxu0 %v4727_v37  ;;  %v4728_v1 = vsub.f32 %v4687_v21, %v3296_v36  ;;  %v4729_v29 = vsub.f32 %v4688_v60, %v3296_v36  ;;  %v4734_v37 = vld [vmem:[#allocation32_spill] sm:$0xff] }
 0x2d5   :  { %v2585_v48 = vpop.eup %2584  ;;  %v898_v16 = vadd.f32 %v3542_v50, %v897_v55  ;;  %2604 = vpow2.f32 %v818_v15  ;;  %v919_v31 = vadd.f32 %v2579_v6, %v918_v44  ;;  %2342 = vmatprep.subr.bf16.mxu0 %v2341_v11  ;;  %v2345_v27 = vpack.c.bf16 %v2583_v57, %v2581_v40 }
 0x2d6   :  { %v2587_v24 = vpop.eup %2586  ;;  %2606 = vpow2.f32 %v822_v10  ;;  %v838_v63 = vmul.f32 1.442695, %v4728_v1  ;;  %v842_v59 = vmul.f32 1.442695, %v4729_v29  ;;  %v4730_v6 = vsub.f32 %v4689_v13, %v3296_v36 }
 0x2d7   :  { %v2589_v38 = vpop.eup %2588  ;;  %v899_v52 = vadd.f32 %v3550_v0, %v898_v16  ;;  %2608 = vpow2.f32 %v826_v9  ;;  %v920_v49 = vadd.f32 %v2581_v40, %v919_v31  ;;  %v2349_v55 = vpack.c.bf16 %v2587_v24, %v2585_v48 }
 0x2d8   :  { %v2591_v15 = vpop.eup %2590  ;;  %2610 = vpow2.f32 %v830_v23  ;;  %v846_v10 = vmul.f32 1.442695, %v4730_v6  ;;  %v4731_v21 = vsub.f32 %v4690_v3, %v3296_v36  ;;  %v4732_v60 = vpack.c.bf16 %v3436_v51, %v3428_v14 }
 0x2d9   :  { %v2593_v11 = vpop.eup %2592  ;;  %v900_v2 = vadd.f32 %v3559_v34, %v899_v52  ;;  %2612 = vpow2.f32 %v834_v54  ;;  %v921_v40 = vadd.f32 %v2583_v57, %v920_v49  ;;  %v2353_v9 = vpack.c.bf16 %v2591_v15, %v2589_v38 }
 0x2da   :  { %v850_v44 = vmul.f32 1.442695, %v4731_v21  ;;  %2344 = vmatpush1.bf16.msra.mxu0 %v4732_v60  ;;  %v2595_v23 = vpop.eup %2594  ;;  %2614 = vpow2.f32 %v838_v63  ;;  %v4733_v13 = vsub.f32 %v4691_v41, %v3296_v36  ;;  %v4735_v3 = vsub.f32 %v4734_v37, %v3296_v36  ;;  %v4737_v63 = vld [vmem:[#allocation34_spill] sm:$0xff] }
 0x2db   :  { %2346 = vmatprep.subr.bf16.mxu0 %v2345_v27  ;;  %v2597_v31 = vpop.eup %2596  ;;  %v901_v14 = vadd.f32 %v3570_v42, %v900_v2  ;;  %2616 = vpow2.f32 %v842_v59  ;;  %v922_v51 = vadd.f32 %v2585_v48, %v921_v40  ;;  %v2357_v1 = vpack.c.bf16 %v2595_v23, %v2593_v11 }
 0x2dc   :  { %v854_v45 = vmul.f32 1.442695, %v4733_v13  ;;  %v858_v16 = vmul.f32 1.442695, %v4735_v3  ;;  %v2599_v54 = vpop.eup %2598  ;;  %2618 = vpow2.f32 %v846_v10  ;;  %v4736_v57 = vsub.f32 %v4693_v22, %v3296_v36 }
 0x2dd   :  { %v4738_v41 = vsub.f32 %v4737_v63, %v3296_v36  ;;  %v4739_v52 = vpack.c.bf16 %v3451_v33, %v3444_v53  ;;  %v2601_v49 = vpop.eup %2600  ;;  %v902_v6 = vadd.f32 %v3579_v8, %v901_v14  ;;  %2620 = vpow2.f32 %v850_v44 }
 0x2de   :  { %v862_v27 = vmul.f32 1.442695, %v4736_v57  ;;  %v923_v48 = vadd.f32 %v2587_v24, %v922_v51  ;;  %v2361_v59 = vpack.c.bf16 %v2599_v54, %v2597_v31  ;;  %v2603_v10 = vpop.eup %2602  ;;  %2622 = vpow2.f32 %v854_v45  ;;  %v4742_v24 = vld [vmem:[#allocation37_spill] sm:$0xff] }
 0x2df   :  { %v866_v29 = vmul.f32 1.442695, %v4738_v41  ;;  %2348 = vmatpush1.bf16.msra.mxu0 %v4739_v52  ;;  %v4740_v22 = vsub.f32 %v4695_v62, %v3296_v36  ;;  %v4741_v60 = vsub.f32 %v4696_v28, %v3296_v36  ;;  %v2605_v40 = vpop.eup %2604  ;;  %v903_v33 = vadd.f32 %v3587_v5, %v902_v6 }
 0x2e0   :  { %2350 = vmatprep.subr.bf16.mxu0 %v2349_v55  ;;  %2624 = vpow2.f32 %v858_v16  ;;  %v924_v53 = vadd.f32 %v2589_v38, %v923_v48  ;;  %v2365_v13 = vpack.c.bf16 %v2603_v10, %v2601_v49  ;;  %v2607_v44 = vpop.eup %2606  ;;  %v4743_v55 = vsub.f32 %v4742_v24, %v3296_v36 }
 0x2e1   :  { %v870_v21 = vmul.f32 1.442695, %v4740_v22  ;;  %v874_v2 = vmul.f32 1.442695, %v4741_v60  ;;  %2626 = vpow2.f32 %v862_v27  ;;  %v4744_v62 = vpack.c.bf16 %v3466_v47, %v3459_v17  ;;  %v2609_v37 = vpop.eup %2608 }
 0x2e2   :  { %v878_v45 = vmul.f32 1.442695, %v4743_v55  ;;  %v904_v28 = vadd.f32 %v3594_v18, %v903_v33  ;;  %2628 = vpow2.f32 %v866_v29  ;;  %v925_v3 = vadd.f32 %v2591_v15, %v924_v53  ;;  %v2611_v16 = vpop.eup %2610 }
 0x2e3   :  { %2352 = vmatpush1.bf16.msra.mxu0 %v4744_v62  ;;  %v2369_v14 = vpack.c.bf16 %v2607_v44, %v2605_v40  ;;  %2630 = vpow2.f32 %v870_v21  ;;  %v2613_v38 = vpop.eup %2612  ;;  %v2373_v36 = vpack.c.bf16 %v2611_v16, %v2609_v37  ;;  %v4745_v47 = vpack.c.bf16 %v3481_v56, %v3474_v25 }
 0x2e4   :  { %2354 = vmatprep.subr.bf16.mxu0 %v2353_v9  ;;  %v905_v51 = vadd.f32 %v3602_v19, %v904_v28  ;;  %2632 = vpow2.f32 %v874_v2  ;;  %v926_v57 = vadd.f32 %v2593_v11, %v925_v3  ;;  %v2615_v27 = vpop.eup %2614  ;;  %v4746_v22 = vpack.c.bf16 %v3495_v43, %v3489_v30 }
 0x2e5   :  { %2634 = vpow2.f32 %v878_v45  ;;  %v2617_v17 = vpop.eup %2616  ;;  %v2377_v9 = vpack.c.bf16 %v2615_v27, %v2613_v38  ;;  %v4748_v28 = vpack.c.bf16 %v3520_v61, %v3514_v32  ;;  %v4752_v32 = vpack.c.bf16 %v3559_v34, %v3550_v0 }
 0x2e6   :  { %v906_v63 = vadd.f32 %v3609_v39, %v905_v51  ;;  %v927_v15 = vadd.f32 %v2595_v23, %v926_v57  ;;  %v2619_v41 = vpop.eup %2618  ;;  %v4755_v0 = vpack.c.bf16 %v3609_v39, %v3602_v19  ;;  %v4762_v19 = vld [vmem:[#allocation50_spill] sm:$0xff] }
 0x2e7   :  { %2356 = vmatpush1.bf16.msra.mxu0 %v4745_v47  ;;  %v2621_v29 = vpop.eup %2620  ;;  %v2381_v48 = vpack.c.bf16 %v2619_v41, %v2617_v17  ;;  %v4760_v47 = vld [vmem:[#allocation40_spill] sm:$0xff] }
 0x2e8   :  { %2358 = vmatprep.subr.bf16.mxu0 %v2357_v1  ;;  %v907_v52 = vadd.f32 %v3617_v35, %v906_v63  ;;  %v928_v6 = vadd.f32 %v2597_v31, %v927_v15  ;;  %v2623_v11 = vpop.eup %2622  ;;  %v4747_v31 = vpack.c.bf16 %v3508_v12, %v3501_v46  ;;  %v4749_v46 = vld [vmem:[#allocation16_spill] sm:$0xff] }
 0x2e9   :  { %v2385_v60 = vpack.c.bf16 %v2623_v11, %v2621_v29  ;;  %v4750_v12 = vpack.c.bf16 %v3531_v4, %v4749_v46  ;;  %v4753_v4 = vpack.c.bf16 %v3579_v8, %v3570_v42  ;;  %v4756_v42 = vpack.c.bf16 %v3625_v20, %v3617_v35  ;;  %v4763_v63 = vld [vmem:[#allocation52_spill] sm:$0xff]  ;;  %v4766_v35 = vld [vmem:[#allocation49_spill] sm:$0xff] }
 0x2ea   :  { %v2625_v21 = vpop.eup %2624  ;;  %v908_v25 = vadd.f32 %v3625_v20, %v907_v52  ;;  %v929_v56 = vadd.f32 %v2599_v54, %v928_v6  ;;  %v2405_v15 = vpack.c.bf16 %v4763_v63, %v4762_v19  ;;  %v4765_v20 = vld [vmem:[#allocation42_spill] sm:$0xff]  ;;  %v4768_v52 = vld [vmem:[#allocation41_spill] sm:$0xff]  ;;  %v4771_v6 = vld [vmem:[#allocation48_spill] sm:$0xff] }
 0x2eb   :  { %2360 = vmatpush1.bf16.msra.mxu0 %v4746_v22  ;;  %v2627_v23 = vpop.eup %2626  ;;  %v2772_v22 = vld [vmem:[#allocation8] sm:$0xff] }
 0x2ec   :  { %2362 = vmatprep.subr.bf16.mxu0 %v2361_v59  ;;  %v2629_v1 = vpop.eup %2628  ;;  %v909_v2 = vadd.f32 %v3630_v58, %v908_v25  ;;  %v930_v33 = vadd.f32 %v2601_v49, %v929_v56  ;;  %v2389_v53 = vpack.c.bf16 %v2627_v23, %v2625_v21  ;;  %v2774_v25 = vld [vmem:[#allocation8 + $0x10] sm:$0xff]  ;;  %v2775_v56 = vld [vmem:[#allocation8 + $0x18] sm:$0xff] }
 0x2ed   :  { %v2631_v24 = vpop.eup %2630 }
 0x2ee   :  { %v2633_v55 = vpop.eup %2632  ;;  %v3736_v43 = vadd.f32 %v3638_v26, %v909_v2  ;;  %v931_v30 = vadd.f32 %v2603_v10, %v930_v33  ;;  %v2393_v54 = vpack.c.bf16 %v2631_v24, %v2629_v1  ;;  %v4751_v10 = vpack.c.bf16 %v3542_v50, %v3536_v7 }
 0x2ef   :  { %2364 = vmatpush1.bf16.msra.mxu0 %v4747_v31  ;;  %v2635_v59 = vpop.eup %2634  ;;  %v4754_v7 = vpack.c.bf16 %v3594_v18, %v3587_v5  ;;  %v4759_v18 = vpack.c.bf16 %v3638_v26, %v3630_v58  ;;  %v4769_v58 = vld [vmem:[#allocation45_spill] sm:$0xff]  ;;  %v4770_v26 = vld [vmem:[#allocation43_spill] sm:$0xff] }
 0x2f0   :  { %2366 = vmatprep.subr.bf16.mxu0 %v2365_v13  ;;  %v932_v45 = vadd.f32 %v2605_v40, %v931_v30  ;;  %v2397_v62 = vpack.c.bf16 %v2635_v59, %v2633_v55 }
 0x2f2   :  { %v933_v49 = vadd.f32 %v2607_v44, %v932_v45 }
 0x2f3   :  { %2368 = vmatpush1.bf16.msra.mxu0 %v4748_v28 }
 0x2f4   :  { %2370 = vmatprep.subr.bf16.mxu0 %v2369_v14  ;;  %v934_v3 = vadd.f32 %v2609_v37, %v933_v49 }
 0x2f6   :  { %v935_v51 = vadd.f32 %v2611_v16, %v934_v3 }
 0x2f7   :  { %2372 = vmatpush1.bf16.msra.mxu0 %v4750_v12 }
 0x2f8   :  { %2374 = vmatprep.subr.bf16.mxu0 %v2373_v36  ;;  %v936_v57 = vadd.f32 %v2613_v38, %v935_v51  ;;  %v4757_v36 = vld [vmem:[#allocation39_spill] sm:$0xff] }
 0x2fa   :  { %v937_v40 = vadd.f32 %v2615_v27, %v936_v57  ;;  %v4758_v27 = vld [vmem:[#allocation46_spill] sm:$0xff] }
 0x2fb   :  { %2376 = vmatpush1.bf16.msra.mxu0 %v4751_v10  ;;  %v2401_v5 = vpack.c.bf16 %v4758_v27, %v4757_v36  ;;  %v2776_v57 = vld [vmem:[#allocation3] sm:$0xff] }
 0x2fc   :  { %2378 = vmatprep.subr.bf16.mxu0 %v2377_v9  ;;  %v938_v13 = vadd.f32 %v2617_v17, %v937_v40  ;;  %v4761_v17 = vld [vmem:[#allocation44_spill] sm:$0xff]  ;;  %v4764_v9 = vld [vmem:[#allocation38_spill] sm:$0xff] }
 0x2fd   :  { %v2403_v39 = vpack.c.bf16 %v4761_v17, %v4760_v47  ;;  %v2781_v47 = vld [vmem:[#allocation3 + $0x28] sm:$0xff] }
 0x2fe   :  { %v939_v61 = vadd.f32 %v2619_v41, %v938_v13  ;;  %v4767_v41 = vld [vmem:[#allocation51_spill] sm:$0xff] }
 0x2ff   :  { %2380 = vmatpush1.bf16.msra.mxu0 %v4752_v32  ;;  %v2777_v13 = vld [vmem:[#allocation3 + $0x8] sm:$0xff] }
 0x300   :  { %2382 = vmatprep.subr.bf16.mxu0 %v2381_v48  ;;  %v940_v44 = vadd.f32 %v2621_v29, %v939_v61  ;;  %v2407_v29 = vpack.c.bf16 %v4767_v41, %v4766_v35  ;;  %v4772_v48 = vld [vmem:[#allocation47_spill] sm:$0xff]  ;;  %v2783_v41 = vld [vmem:[#allocation3 + $0x38] sm:$0xff] }
 0x302   :  { %v941_v37 = vadd.f32 %v2623_v11, %v940_v44  ;;  %v4773_v11 = vmov 0.0   ;;  %v2502_v44 = vld [vmem:[#allocation6 + $0x20] ss:$8 sps:$4 sm:$0xff]  }
 0x303   :  { %2384 = vmatpush1.bf16.msra.mxu0 %v4753_v4  ;;  %v2504_v4 = vld [vmem:[#allocation6 + $0x24] ss:$8 sps:$4 sm:$0xff]  }
 0x304   :  { %2386 = vmatprep.subr.bf16.mxu0 %v2385_v60  ;;  %v942_v14 = vadd.f32 %v2625_v21, %v941_v37  ;;  %v2773_v21 = vld [vmem:[#allocation8 + $0x8] sm:$0xff]  ;;  %v911_v60 = vrot.slane %v3736_v43, 4  ;;  %2045 = vmatprep.subr.bf16.mxu1 %v2504_v4 }
 0x305   :  { %2046 = vmatpush1.bf16.msra.mxu1 %v2502_v44 }
 0x306   :  { %v943_v50 = vadd.f32 %v2627_v23, %v942_v14 }
 0x307   :  { %2388 = vmatpush1.bf16.msra.mxu0 %v4754_v7 }
 0x308   :  { %2390 = vmatprep.subr.bf16.mxu0 %v2389_v53  ;;  %v944_v16 = vadd.f32 %v2629_v1, %v943_v50  ;;  %v912_v1 = vadd.f32 %v911_v60, %v3736_v43  ;;  %v2778_v50 = vld [vmem:[#allocation3 + $0x10] sm:$0xff] }
 0x30a   :  { %v945_v34 = vadd.f32 %v2631_v24, %v944_v16  ;;  %v913_v33 = vrot.slane %v912_v1, 2 }
 0x30b   :  { %2392 = vmatpush1.bf16.msra.mxu0 %v4755_v0  ;;  %v2779_v0 = vld [vmem:[#allocation3 + $0x18] sm:$0xff] }
 0x30c   :  { %2394 = vmatprep.subr.bf16.mxu0 %v2393_v54  ;;  %v946_v38 = vadd.f32 %v2633_v55, %v945_v34  ;;  %v914_v24 = vadd.f32 %v913_v33, %v912_v1 }
 0x30e   :  { %v947_v8 = vadd.f32 %v2635_v59, %v946_v38  ;;  %v915_v55 = vrot.slane %v914_v24, 1 }
 0x30f   :  { %2396 = vmatpush1.bf16.msra.mxu0 %v4756_v42 }
 0x310   :  { %2398 = vmatprep.subr.bf16.mxu0 %v2397_v62  ;;  %v948_v23 = vrot.slane %v947_v8, 4  ;;  %v916_v54 = vadd.f32 %v915_v55, %v914_v24  ;;  %v3794_v62 = vstv %s4534_s0  ;;  %v2507_v24 = vld [vmem:[#allocation6 + $0x34] ss:$8 sps:$4 sm:$0xff]   ;;  %v2784_v55 = vld [vmem:[#allocation9] sm:$0xff]   ;;  %s2924_s0 = smov [#allocation11]  }
 0x311   :  { %4774 = vst [vmem:[#allocation17_spill] sm:$0xff] %v3794_v62  ;;  %2047 = vmatprep.subr.bf16.mxu1 %v2507_v24  ;;  %s2221_s21 = sshll.u32 %s2924_s0, 4  ;;  %s2222_s21 = int_to_ptr.vmem [resolvable:$true] %s2221_s21 }
 0x312   :  { %v949_v2 = vadd.f32 %v948_v23, %v947_v8  ;;  %2636 = vrcp.f32 %v916_v54  ;;  %v4775_v54 = vmov 0   ;;  %s2882_s22 = scalar_lea.vmem %s2222_s21, 2048  ;;  %p2887_p5 = scmp.lt.s32.totalorder %s2222_s21, %s2222_s21 }
 0x313   :  { %2400 = vmatpush1.bf16.msra.mxu0 %v4759_v18  ;;  %p2883_p4 = scmp.ne.s32.totalorder %s2222_s21, %s2882_s22  ;;  %p2888_p6 = scmp.lt.s32.totalorder %s2882_s22, %s2882_s22 }
 0x314   :  { %2402 = vmatprep.subr.bf16.mxu0 %v2401_v5  ;;  %v950_v53 = vrot.slane %v949_v2, 2  ;;  %v2780_v5 = vld [vmem:[#allocation3 + $0x20] sm:$0xff] }
 0x315   :  { %p2889_p7 = por %p2888_p6, %p2887_p5 }
 0x316   :  { %1112 = vmatmul.mubr.f32.vlgmr.msra.gmra.mrb[8].mxu0 %v4764_v9  ;;  %v951_v31 = vadd.f32 %v950_v53, %v949_v2  ;;  %v2782_v9 = vld [vmem:[#allocation3 + $0x30] sm:$0xff] }
 0x317   :  { %1117 = vmatprep.mubr.f32.mxu0 %v4765_v20  ;;  %2404 = vmatpush1.bf16.msra.mxu0 %v2403_v39  ;;  %v2505_v53 = vld [vmem:[#allocation6 + $0x30] ss:$8 sps:$4 sm:$0xff]   ;;  %p2890_p8 = pnand %p2889_p7, %p2883_p4 }
 0x318   :  { %2406 = vmatprep.subr.bf16.mxu0 %v2405_v15  ;;  %v952_v30 = vrot.slane %v951_v31, 1  ;;  %2048 = vmatpush1.bf16.msra.mxu1 %v2505_v53 }
 0x31a   :  { %1118 = vmatmul.mubr.f32.gmra.mrb[10].mxu0 %v4768_v52  ;;  %v953_v59 = vadd.f32 %v952_v30, %v951_v31 }
 0x31b   :  { %1123 = vmatprep.mubr.f32.mxu0 %v4769_v58  ;;  %2408 = vmatpush1.bf16.msra.mxu0 %v2407_v29 }
 0x31c   :  { %2638 = vrcp.f32 %v953_v59  ;;  %v2637_v45 = vpop.eup %2636  ;;  %2319 = vmatmul.mubr.msk.bf16.vlgmr.msra.gmra.mrb[72].mxu1 %vm95_vm0, %v2784_v55 }
 0x31d   :  { %v1139_v43 = vmul.f32 %v2637_v45, %v3794_v62  ;;  %v3798_v40 = vpop.trf.xlu0  ;;  %2087 = vmatprep.mubr.bf16.mxu1 %v4775_v54  ;;  %v2785_v45 = vld [vmem:[#allocation9 + $0x8] sm:$0xff]  }
 0x31e   :  { %1124 = vmatmul.mubr.f32.gmra.mrb[12].mxu0 %v4770_v26 }
 0x31f   :  { %1129 = vmatprep.mubr.f32.mxu0 %v4771_v6 }
 0x321   :  { %v1280_v36 = vpop.trf.xlu0 }
 0x322   :  { %1130 = vmatmul.mubr.f32.gmra.mrb[14].mxu0 %v4772_v48 }
 0x323   :  { %1238 = vmatprep.mubr.f32.mxu0 %v4773_v11 }
 0x324   :  { %2320 = vmatmul.mubr.msk.bf16.gmra.mrb[76].mxu1 %vm95_vm0, %v2785_v45 }
 0x325   :  { %v1281_v35 = vpop.trf.xlu0 }
 0x326   :  { %2279 = vmatmul.mubr.msk.f32.vlgmr.msra.gmra.mrb[16].mxu0 %vm95_vm0, %v2772_v22  ;;  %v2639_v28 = vpop.eup %2638 }
 0x327   :  { %1244 = vmatprep.mubr.f32.mxu0 %v4773_v11  ;;  %v1140_v3 = vmul.f32 %v2639_v28, %v3794_v62 }
 0x329   :  { %v1282_v22 = vpop.trf.xlu0 }
 0x32a   :  { %2280 = vmatmul.mubr.msk.f32.gmra.mrb[18].mxu0 %vm95_vm0, %v2773_v21 }
 0x32b   :  { %1250 = vmatprep.mubr.f32.mxu0 %v4773_v11 }
 0x32d   :  { %v1283_v60 = vpop.trf.xlu0 }
 0x32e   :  { %2281 = vmatmul.mubr.msk.f32.gmra.mrb[20].mxu0 %vm95_vm0, %v2774_v25 }
 0x32f   :  { %1256 = vmatprep.mubr.f32.mxu0 %v4773_v11 }
 0x331   :  { %v1284_v31 = vpop.trf.xlu0 }
 0x332   :  { %2282 = vmatmul.mubr.msk.f32.gmra.mrb[22].mxu0 %vm95_vm0, %v2775_v56 }
 0x333   :  { %1487 = vmatprep.mubr.f32.mxu0 %v4773_v11 }
 0x335   :  { %v1285_v30 = vpop.trf.xlu0 }
 0x339   :  { %v1286_v59 = vpop.trf.xlu0 }
 0x33d   :  { %v1287_v28 = vpop.trf.xlu0 }
 0x3e9   :  { %v1113_v49 = vpop.f32.mrb[8].mxu0 }
 0x3ea   :  { %v1141_v46 = vmul.f32 %v1139_v43, %v1113_v49  ;;  %v1115_v12 = vpop.f32.mrb[9].mxu0 }
 0x3eb   :  { %v1142_v51 = vmul.f32 %v1140_v3, %v1115_v12 }
 0x3ec   :  { %v1149_v10 = vadd.f32 %v2776_v57, %v1141_v46 }
 0x3ed   :  { %v1150_v32 = vadd.f32 %v2777_v13, %v1142_v51  ;;  %v1119_v61 = vpop.f32.mrb[10].mxu0 }
 0x3ee   :  { %1157 = vst [vmem:[#allocation11] sm:$0xff] %v1149_v10  ;;  %v1143_v37 = vmul.f32 %v1139_v43, %v1119_v61  ;;  %v1121_v14 = vpop.f32.mrb[11].mxu0 }
 0x3ef   :  { %1158 = vst [vmem:[#allocation11 + $0x8] sm:$0xff] %v1150_v32  ;;  %v1144_v7 = vmul.f32 %v1140_v3, %v1121_v14 }
 0x3f0   :  { %v1151_v16 = vadd.f32 %v2778_v50, %v1143_v37 }
 0x3f1   :  { %v1152_v34 = vadd.f32 %v2779_v0, %v1144_v7  ;;  %v1125_v38 = vpop.f32.mrb[12].mxu0 }
 0x3f2   :  { %1159 = vst [vmem:[#allocation11 + $0x10] sm:$0xff] %v1151_v16  ;;  %v1145_v42 = vmul.f32 %v1139_v43, %v1125_v38  ;;  %v1127_v8 = vpop.f32.mrb[13].mxu0 }
 0x3f3   :  { %1160 = vst [vmem:[#allocation11 + $0x18] sm:$0xff] %v1152_v34  ;;  %v1146_v27 = vmul.f32 %v1140_v3, %v1127_v8 }
 0x3f4   :  { %v1153_v18 = vadd.f32 %v2780_v5, %v1145_v42 }
 0x3f5   :  { %v1154_v17 = vadd.f32 %v2781_v47, %v1146_v27  ;;  %v1131_v39 = vpop.f32.mrb[14].mxu0 }
 0x3f6   :  { %1161 = vst [vmem:[#allocation11 + $0x20] sm:$0xff] %v1153_v18  ;;  %v1147_v19 = vmul.f32 %v1139_v43, %v1131_v39  ;;  %v1133_v63 = vpop.f32.mrb[15].mxu0  ;;  %v1288_v43 = vpop.trf.xlu0 }
 0x3f7   :  { %1162 = vst [vmem:[#allocation11 + $0x28] sm:$0xff] %v1154_v17  ;;  %v1148_v15 = vmul.f32 %v1140_v3, %v1133_v63  ;;  %v1311_v3 = vpop.trf.xlu1 }
 0x3f8   :  { %v1155_v20 = vadd.f32 %v2782_v9, %v1147_v19 }
 0x3f9   :  { %v1156_v29 = vadd.f32 %v2783_v41, %v1148_v15  ;;  %v1240_v52 = vpop.f32.mrb[16].mxu0 }
 0x3fa   :  { %1163 = vst [vmem:[#allocation11 + $0x30] sm:$0xff] %v1155_v20  ;;  %v1242_v58 = vpop.f32.mrb[17].mxu0  ;;  %v1289_v49 = vpop.trf.xlu0 }
 0x3fb   :  { %1164 = vst [vmem:[#allocation11 + $0x38] sm:$0xff] %v1156_v29  ;;  %v1312_v12 = vpop.trf.xlu1 }
 0x3fd   :  { %v1246_v26 = vpop.f32.mrb[18].mxu0 }
 0x3fe   :  { %v2411_v6 = vpack.c.bf16 %v1246_v26, %v1240_v52  ;;  %v1248_v48 = vpop.f32.mrb[19].mxu0  ;;  %v1290_v46 = vpop.trf.xlu0 }
 0x3ff   :  { %v2409_v21 = vpack.c.bf16 %v1248_v48, %v1242_v58  ;;  %v1313_v57 = vpop.trf.xlu1 }
 0x401   :  { %v1252_v25 = vpop.f32.mrb[20].mxu0  ;;  %2410 = vmatprep.subr.bf16.mxu0 %v2409_v21 }
 0x402   :  { %v1254_v56 = vpop.f32.mrb[21].mxu0  ;;  %2412 = vmatpush1.bf16.msra.mxu0 %v2411_v6  ;;  %v1291_v51 = vpop.trf.xlu0 }
 0x405   :  { %v1258_v23 = vpop.f32.mrb[22].mxu0 }
 0x406   :  { %v2415_v1 = vpack.c.bf16 %v1258_v23, %v1252_v25  ;;  %v1260_v2 = vpop.f32.mrb[23].mxu0  ;;  %v1292_v10 = vpop.trf.xlu0 }
 0x407   :  { %v2413_v33 = vpack.c.bf16 %v1260_v2, %v1254_v56 }
 0x409   :  { %2414 = vmatprep.subr.bf16.mxu0 %v2413_v33 }
 0x40a   :  { %2416 = vmatpush1.bf16.msra.mxu0 %v2415_v1  ;;  %v1293_v13 = vpop.trf.xlu0 }
 0x40d   :  { %2283 = vmatmul.mubr.msk.f32.vlgmr.msra.gmra.mrb[24].mxu0 %vm95_vm0, %v3798_v40  ;;  %v1314_v40 = vpop.trf.xlu1 }
 0x40e   :  { %1493 = vmatprep.mubr.f32.mxu0 %v4773_v11  ;;  %v1294_v61 = vpop.trf.xlu0 }
 0x411   :  { %2284 = vmatmul.mubr.msk.f32.gmra.mrb[26].mxu0 %vm95_vm0, %v1280_v36  ;;  %v1315_v32 = vpop.trf.xlu1 }
 0x412   :  { %1499 = vmatprep.mubr.f32.mxu0 %v4773_v11 }
 0x415   :  { %2285 = vmatmul.mubr.msk.f32.gmra.mrb[28].mxu0 %vm95_vm0, %v1281_v35  ;;  %v1316_v44 = vpop.trf.xlu1 }
 0x416   :  { %1505 = vmatprep.mubr.f32.mxu0 %v4773_v11 }
 0x419   :  { %2286 = vmatmul.mubr.msk.f32.gmra.mrb[30].mxu0 %vm95_vm0, %v1282_v22  ;;  %v1317_v4 = vpop.trf.xlu1 }
 0x41a   :  { %1511 = vmatprep.mubr.f32.mxu0 %v4773_v11 }
 0x41d   :  { %2287 = vmatmul.mubr.msk.f32.gmra.mrb[32].mxu0 %vm95_vm0, %v1283_v60  ;;  %v1318_v37 = vpop.trf.xlu1 }
 0x41e   :  { %1517 = vmatprep.mubr.f32.mxu0 %v4773_v11 }
 0x421   :  { %2288 = vmatmul.mubr.msk.f32.gmra.mrb[34].mxu0 %vm95_vm0, %v1284_v31  ;;  %v1319_v14 = vpop.trf.xlu1 }
 0x422   :  { %1523 = vmatprep.mubr.f32.mxu0 %v4773_v11 }
 0x425   :  { %2289 = vmatmul.mubr.msk.f32.gmra.mrb[36].mxu0 %vm95_vm0, %v1285_v30  ;;  %v1320_v7 = vpop.trf.xlu1 }
 0x426   :  { %1529 = vmatprep.mubr.f32.mxu0 %v4773_v11 }
 0x429   :  { %2290 = vmatmul.mubr.msk.f32.gmra.mrb[38].mxu0 %vm95_vm0, %v1286_v59  ;;  %v1321_v50 = vpop.trf.xlu1 }
 0x42a   :  { %1535 = vmatprep.mubr.f32.mxu0 %v4773_v11 }
 0x42d   :  { %2291 = vmatmul.mubr.msk.f32.gmra.mrb[40].mxu0 %vm95_vm0, %v1287_v28  ;;  %v1322_v16 = vpop.trf.xlu1 }
 0x42e   :  { %1541 = vmatprep.mubr.f32.mxu0 %v4773_v11 }
 0x431   :  { %2292 = vmatmul.mubr.msk.f32.gmra.mrb[42].mxu0 %vm95_vm0, %v1288_v43  ;;  %v1323_v0 = vpop.trf.xlu1 }
 0x432   :  { %1547 = vmatprep.mubr.f32.mxu0 %v4773_v11 }
 0x435   :  { %2293 = vmatmul.mubr.msk.f32.gmra.mrb[44].mxu0 %vm95_vm0, %v1289_v49  ;;  %v1324_v34 = vpop.trf.xlu1 }
 0x436   :  { %1553 = vmatprep.mubr.f32.mxu0 %v4773_v11 }
 0x439   :  { %2294 = vmatmul.mubr.msk.f32.gmra.mrb[46].mxu0 %vm95_vm0, %v1290_v46  ;;  %v1325_v38 = vpop.trf.xlu1 }
 0x43a   :  { %1559 = vmatprep.mubr.f32.mxu0 %v4773_v11 }
 0x43d   :  { %2295 = vmatmul.mubr.msk.f32.gmra.mrb[48].mxu0 %vm95_vm0, %v1291_v51  ;;  %v1326_v42 = vpop.trf.xlu1 }
 0x43e   :  { %1565 = vmatprep.mubr.f32.mxu0 %v4773_v11 }
 0x441   :  { %2296 = vmatmul.mubr.msk.f32.gmra.mrb[50].mxu0 %vm95_vm0, %v1292_v10 }
 0x442   :  { %1571 = vmatprep.mubr.f32.mxu0 %v4773_v11 }
 0x445   :  { %2297 = vmatmul.mubr.msk.f32.gmra.mrb[52].mxu0 %vm95_vm0, %v1293_v13 }
 0x446   :  { %1577 = vmatprep.mubr.f32.mxu0 %v4773_v11 }
 0x449   :  { %2298 = vmatmul.mubr.msk.f32.gmra.mrb[54].mxu0 %vm95_vm0, %v1294_v61 }
 0x44a   :  { %1583 = vmatprep.mubr.f32.mxu0 %v4773_v11 }
 0x44d   :  { %2299 = vmatmul.mubr.msk.f32.gmra.mrb[56].mxu0 %vm95_vm0, %v1311_v3 }
 0x44e   :  { %1589 = vmatprep.mubr.f32.mxu0 %v4773_v11 }
 0x451   :  { %2300 = vmatmul.mubr.msk.f32.gmra.mrb[58].mxu0 %vm95_vm0, %v1312_v12 }
 0x452   :  { %1595 = vmatprep.mubr.f32.mxu0 %v4773_v11 }
 0x455   :  { %2301 = vmatmul.mubr.msk.f32.gmra.mrb[60].mxu0 %vm95_vm0, %v1313_v57 }
 0x456   :  { %1601 = vmatprep.mubr.f32.mxu0 %v4773_v11 }
 0x459   :  { %2302 = vmatmul.mubr.msk.f32.gmra.mrb[62].mxu0 %vm95_vm0, %v1314_v40 }
 0x45a   :  { %1607 = vmatprep.mubr.f32.mxu0 %v4773_v11 }
 0x45d   :  { %2303 = vmatmul.mubr.msk.f32.gmra.mrb[64].mxu0 %vm95_vm0, %v1315_v32 }
 0x45e   :  { %1613 = vmatprep.mubr.f32.mxu0 %v4773_v11 }
 0x461   :  { %2304 = vmatmul.mubr.msk.f32.gmra.mrb[66].mxu0 %vm95_vm0, %v1316_v44 }
 0x462   :  { %1619 = vmatprep.mubr.f32.mxu0 %v4773_v11 }
 0x465   :  { %2305 = vmatmul.mubr.msk.f32.gmra.mrb[68].mxu0 %vm95_vm0, %v1317_v4 }
 0x466   :  { %1625 = vmatprep.mubr.f32.mxu0 %v4773_v11 }
 0x469   :  { %2306 = vmatmul.mubr.msk.f32.gmra.mrb[70].mxu0 %vm95_vm0, %v1318_v37 }
 0x46a   :  { %1631 = vmatprep.mubr.f32.mxu0 %v4773_v11 }
 0x46d   :  { %2307 = vmatmul.mubr.msk.f32.gmra.mrb[72].mxu0 %vm95_vm0, %v1319_v14 }
 0x46e   :  { %1637 = vmatprep.mubr.f32.mxu0 %v4773_v11 }
 0x471   :  { %2308 = vmatmul.mubr.msk.f32.gmra.mrb[74].mxu0 %vm95_vm0, %v1320_v7 }
 0x472   :  { %1643 = vmatprep.mubr.f32.mxu0 %v4773_v11 }
 0x475   :  { %2309 = vmatmul.mubr.msk.f32.gmra.mrb[76].mxu0 %vm95_vm0, %v1321_v50 }
 0x476   :  { %1649 = vmatprep.mubr.f32.mxu0 %v4773_v11 }
 0x479   :  { %2310 = vmatmul.mubr.msk.f32.gmra.mrb[78].mxu0 %vm95_vm0, %v1322_v16 }
 0x47a   :  { %1655 = vmatprep.mubr.f32.mxu0 %v4773_v11 }
 0x47d   :  { %2311 = vmatmul.mubr.msk.f32.gmra.mrb[80].mxu0 %vm95_vm0, %v1323_v0 }
 0x47e   :  { %1661 = vmatprep.mubr.f32.mxu0 %v4773_v11 }
 0x481   :  { %2312 = vmatmul.mubr.msk.f32.gmra.mrb[82].mxu0 %vm95_vm0, %v1324_v34 }
 0x482   :  { %1667 = vmatprep.mubr.f32.mxu0 %v4773_v11 }
 0x485   :  { %2313 = vmatmul.mubr.msk.f32.gmra.mrb[84].mxu0 %vm95_vm0, %v1325_v38 }
 0x486   :  { %1673 = vmatprep.mubr.f32.mxu0 %v4773_v11 }
 0x489   :  { %2314 = vmatmul.mubr.msk.f32.gmra.mrb[86].mxu0 %vm95_vm0, %v1326_v42 }
 0x4e0   :  { %v3867_v8 = vpop.f32.mrb[24].mxu0 }
 0x4e1   :  { %v3869_v36 = vpop.f32.mrb[25].mxu0 }
 0x4e4   :  { %v3871_v27 = vpop.f32.mrb[26].mxu0 }
 0x4e5   :  { %v3873_v5 = vpop.f32.mrb[27].mxu0 }
 0x4e8   :  { %v3875_v18 = vpop.f32.mrb[28].mxu0 }
 0x4e9   :  { %v1680_v47 = vmax.f32 %v3867_v8, %v3875_v18  ;;  %v3879_v17 = vpop.f32.mrb[29].mxu0 }
 0x4ea   :  { %v1717_v11 = vmax.f32 %v3869_v36, %v3879_v17 }
 0x4ec   :  { %v3883_v39 = vpop.f32.mrb[30].mxu0 }
 0x4ed   :  { %v1681_v19 = vmax.f32 %v3871_v27, %v3883_v39  ;;  %v3887_v63 = vpop.f32.mrb[31].mxu0 }
 0x4ee   :  { %v1718_v15 = vmax.f32 %v3873_v5, %v3887_v63 }
 0x4f0   :  { %v3891_v9 = vpop.f32.mrb[32].mxu0 }
 0x4f1   :  { %v1682_v20 = vmax.f32 %v1680_v47, %v3891_v9  ;;  %v3894_v35 = vpop.f32.mrb[33].mxu0 }
 0x4f2   :  { %v1719_v41 = vmax.f32 %v1717_v11, %v3894_v35 }
 0x4f4   :  { %v3897_v29 = vpop.f32.mrb[34].mxu0 }
 0x4f5   :  { %v1683_v52 = vmax.f32 %v1681_v19, %v3897_v29  ;;  %v3900_v58 = vpop.f32.mrb[35].mxu0 }
 0x4f6   :  { %v1720_v26 = vmax.f32 %v1718_v15, %v3900_v58 }
 0x4f8   :  { %v3903_v6 = vpop.f32.mrb[36].mxu0 }
 0x4f9   :  { %v1684_v48 = vmax.f32 %v1682_v20, %v3903_v6  ;;  %v3906_v22 = vpop.f32.mrb[37].mxu0 }
 0x4fa   :  { %v1721_v21 = vmax.f32 %v1719_v41, %v3906_v22 }
 0x4fc   :  { %v3909_v25 = vpop.f32.mrb[38].mxu0 }
 0x4fd   :  { %v1685_v56 = vmax.f32 %v1683_v52, %v3909_v25  ;;  %v3912_v60 = vpop.f32.mrb[39].mxu0 }
 0x4fe   :  { %v1722_v23 = vmax.f32 %v1720_v26, %v3912_v60 }
 0x500   :  { %v3915_v1 = vpop.f32.mrb[40].mxu0 }
 0x501   :  { %v1686_v2 = vmax.f32 %v1684_v48, %v3915_v1  ;;  %v3918_v33 = vpop.f32.mrb[41].mxu0 }
 0x502   :  { %v1723_v53 = vmax.f32 %v1721_v21, %v3918_v33 }
 0x504   :  { %v3921_v24 = vpop.f32.mrb[42].mxu0 }
 0x505   :  { %v1687_v31 = vmax.f32 %v1685_v56, %v3921_v24  ;;  %v3924_v55 = vpop.f32.mrb[43].mxu0 }
 0x506   :  { %v1724_v30 = vmax.f32 %v1722_v23, %v3924_v55 }
 0x508   :  { %v3927_v54 = vpop.f32.mrb[44].mxu0 }
 0x509   :  { %v1688_v59 = vmax.f32 %v1686_v2, %v3927_v54  ;;  %v3930_v45 = vpop.f32.mrb[45].mxu0 }
 0x50a   :  { %v1725_v28 = vmax.f32 %v1723_v53, %v3930_v45 }
 0x50c   :  { %v3933_v43 = vpop.f32.mrb[46].mxu0 }
 0x50d   :  { %v1689_v49 = vmax.f32 %v1687_v31, %v3933_v43  ;;  %v3936_v3 = vpop.f32.mrb[47].mxu0 }
 0x50e   :  { %4776 = vst [vmem:[#allocation18_spill] sm:$0xff] %v3936_v3  ;;  %v1726_v46 = vmax.f32 %v1724_v30, %v3936_v3 }
 0x510   :  { %v3939_v12 = vpop.f32.mrb[48].mxu0 }
 0x511   :  { %v1690_v51 = vmax.f32 %v1688_v59, %v3939_v12  ;;  %v3942_v57 = vpop.f32.mrb[49].mxu0 }
 0x512   :  { %4777 = vst [vmem:[#allocation19_spill] sm:$0xff] %v3942_v57  ;;  %v1727_v10 = vmax.f32 %v1725_v28, %v3942_v57 }
 0x514   :  { %v3945_v40 = vpop.f32.mrb[50].mxu0 }
 0x515   :  { %v1691_v13 = vmax.f32 %v1689_v49, %v3945_v40  ;;  %v3948_v32 = vpop.f32.mrb[51].mxu0 }
 0x516   :  { %4778 = vst [vmem:[#allocation20_spill] sm:$0xff] %v3948_v32  ;;  %v1728_v61 = vmax.f32 %v1726_v46, %v3948_v32 }
 0x518   :  { %v3951_v44 = vpop.f32.mrb[52].mxu0 }
 0x519   :  { %v1692_v4 = vmax.f32 %v1690_v51, %v3951_v44  ;;  %v3954_v37 = vpop.f32.mrb[53].mxu0 }
 0x51a   :  { %4779 = vst [vmem:[#allocation21_spill] sm:$0xff] %v3954_v37  ;;  %v1729_v14 = vmax.f32 %v1727_v10, %v3954_v37 }
 0x51c   :  { %v3957_v7 = vpop.f32.mrb[54].mxu0 }
 0x51d   :  { %v1693_v50 = vmax.f32 %v1691_v13, %v3957_v7  ;;  %v3960_v16 = vpop.f32.mrb[55].mxu0 }
 0x51e   :  { %4780 = vst [vmem:[#allocation22_spill] sm:$0xff] %v3960_v16  ;;  %v1730_v0 = vmax.f32 %v1728_v61, %v3960_v16 }
 0x520   :  { %v3963_v34 = vpop.f32.mrb[56].mxu0 }
 0x521   :  { %v1694_v38 = vmax.f32 %v1692_v4, %v3963_v34  ;;  %v3966_v42 = vpop.f32.mrb[57].mxu0 }
 0x522   :  { %4781 = vst [vmem:[#allocation23_spill] sm:$0xff] %v3966_v42  ;;  %v1731_v47 = vmax.f32 %v1729_v14, %v3966_v42 }
 0x524   :  { %v3969_v11 = vpop.f32.mrb[58].mxu0 }
 0x525   :  { %v1695_v19 = vmax.f32 %v1693_v50, %v3969_v11  ;;  %v3972_v15 = vpop.f32.mrb[59].mxu0 }
 0x526   :  { %4782 = vst [vmem:[#allocation24_spill] sm:$0xff] %v3972_v15  ;;  %v1732_v20 = vmax.f32 %v1730_v0, %v3972_v15 }
 0x528   :  { %v3975_v41 = vpop.f32.mrb[60].mxu0 }
 0x529   :  { %v1696_v52 = vmax.f32 %v1694_v38, %v3975_v41  ;;  %v3978_v26 = vpop.f32.mrb[61].mxu0 }
 0x52a   :  { %4783 = vst [vmem:[#allocation25_spill] sm:$0xff] %v3978_v26  ;;  %v1733_v48 = vmax.f32 %v1731_v47, %v3978_v26 }
 0x52c   :  { %v3981_v21 = vpop.f32.mrb[62].mxu0 }
 0x52d   :  { %v1697_v56 = vmax.f32 %v1695_v19, %v3981_v21  ;;  %v3984_v23 = vpop.f32.mrb[63].mxu0 }
 0x52e   :  { %4784 = vst [vmem:[#allocation26_spill] sm:$0xff] %v3984_v23  ;;  %v1734_v2 = vmax.f32 %v1732_v20, %v3984_v23 }
 0x530   :  { %v3987_v53 = vpop.f32.mrb[64].mxu0 }
 0x531   :  { %v1698_v31 = vmax.f32 %v1696_v52, %v3987_v53  ;;  %v3990_v30 = vpop.f32.mrb[65].mxu0 }
 0x532   :  { %4785 = vst [vmem:[#allocation27_spill] sm:$0xff] %v3990_v30  ;;  %v1735_v59 = vmax.f32 %v1733_v48, %v3990_v30 }
 0x534   :  { %v3993_v28 = vpop.f32.mrb[66].mxu0 }
 0x535   :  { %v1699_v49 = vmax.f32 %v1697_v56, %v3993_v28  ;;  %v3996_v46 = vpop.f32.mrb[67].mxu0 }
 0x536   :  { %4786 = vst [vmem:[#allocation28_spill] sm:$0xff] %v3996_v46  ;;  %v1736_v51 = vmax.f32 %v1734_v2, %v3996_v46 }
 0x538   :  { %v3999_v10 = vpop.f32.mrb[68].mxu0 }
 0x539   :  { %v1700_v13 = vmax.f32 %v1698_v31, %v3999_v10  ;;  %v4002_v61 = vpop.f32.mrb[69].mxu0 }
 0x53a   :  { %4787 = vst [vmem:[#allocation29_spill] sm:$0xff] %v4002_v61  ;;  %v1737_v4 = vmax.f32 %v1735_v59, %v4002_v61 }
 0x53c   :  { %v4005_v14 = vpop.f32.mrb[70].mxu0 }
 0x53d   :  { %v1701_v50 = vmax.f32 %v1699_v49, %v4005_v14  ;;  %v4008_v0 = vpop.f32.mrb[71].mxu0 }
 0x53e   :  { %4788 = vst [vmem:[#allocation30_spill] sm:$0xff] %v4008_v0  ;;  %v1738_v38 = vmax.f32 %v1736_v51, %v4008_v0 }
 0x540   :  { %v4011_v47 = vpop.f32.mrb[72].mxu0 }
 0x541   :  { %v1702_v19 = vmax.f32 %v1700_v13, %v4011_v47  ;;  %v4014_v20 = vpop.f32.mrb[73].mxu0 }
 0x542   :  { %4789 = vst [vmem:[#allocation31_spill] sm:$0xff] %v4014_v20  ;;  %v1739_v52 = vmax.f32 %v1737_v4, %v4014_v20 }
 0x544   :  { %v4017_v48 = vpop.f32.mrb[74].mxu0 }
 0x545   :  { %v1703_v56 = vmax.f32 %v1701_v50, %v4017_v48  ;;  %v4020_v2 = vpop.f32.mrb[75].mxu0 }
 0x546   :  { %4790 = vst [vmem:[#allocation33_spill] sm:$0xff] %v4020_v2  ;;  %v1740_v31 = vmax.f32 %v1738_v38, %v4020_v2 }
 0x548   :  { %v4023_v59 = vpop.f32.mrb[76].mxu0 }
 0x549   :  { %v1704_v49 = vmax.f32 %v1702_v19, %v4023_v59  ;;  %v4026_v51 = vpop.f32.mrb[77].mxu0 }
 0x54a   :  { %4791 = vst [vmem:[#allocation35_spill] sm:$0xff] %v4026_v51  ;;  %v1741_v13 = vmax.f32 %v1739_v52, %v4026_v51 }
 0x54c   :  { %v4029_v62 = vpop.f32.mrb[78].mxu0 }
 0x54d   :  { %v1705_v4 = vmax.f32 %v1703_v56, %v4029_v62  ;;  %v4032_v20 = vpop.f32.mrb[79].mxu0 }
 0x54e   :  { %4792 = vst [vmem:[#allocation36_spill] sm:$0xff] %v4032_v20  ;;  %v1742_v50 = vmax.f32 %v1740_v31, %v4032_v20 }
 0x550   :  { %v4035_v0 = vpop.f32.mrb[80].mxu0 }
 0x551   :  { %v1706_v38 = vmax.f32 %v1704_v49, %v4035_v0  ;;  %v4038_v2 = vpop.f32.mrb[81].mxu0 }
 0x552   :  { %4793 = vst [vmem:[#allocation32_spill] sm:$0xff] %v4038_v2  ;;  %v1743_v19 = vmax.f32 %v1741_v13, %v4038_v2 }
 0x554   :  { %v4041_v61 = vpop.f32.mrb[82].mxu0 }
 0x555   :  { %v1707_v52 = vmax.f32 %v1705_v4, %v4041_v61  ;;  %v4044_v51 = vpop.f32.mrb[83].mxu0 }
 0x556   :  { %4794 = vst [vmem:[#allocation34_spill] sm:$0xff] %v4044_v51  ;;  %v1744_v56 = vmax.f32 %v1742_v50, %v4044_v51 }
 0x558   :  { %v4047_v46 = vpop.f32.mrb[84].mxu0 }
 0x559   :  { %v1708_v31 = vmax.f32 %v1706_v38, %v4047_v46  ;;  %v4050_v20 = vpop.f32.mrb[85].mxu0 }
 0x55a   :  { %4795 = vst [vmem:[#allocation37_spill] sm:$0xff] %v4050_v20  ;;  %v1745_v49 = vmax.f32 %v1743_v19, %v4050_v20 }
 0x55c   :  { %v4053_v30 = vpop.f32.mrb[86].mxu0 }
 0x55d   :  { %v1709_v13 = vmax.f32 %v1707_v52, %v4053_v30  ;;  %v4056_v2 = vpop.f32.mrb[87].mxu0 }
 0x55e   :  { %4796 = vst [vmem:[#allocation16_spill] sm:$0xff] %v4056_v2  ;;  %v1746_v4 = vmax.f32 %v1744_v56, %v4056_v2 }
 0x55f   :  { %v1710_v23 = vmax.f32 %v1708_v31, %v1709_v13 }
 0x560   :  { %v1747_v26 = vmax.f32 %v1745_v49, %v1746_v4 }
 0x561   :  { %v1711_v15 = vrot.slane %v1710_v23, 4 }
 0x562   :  { %v1748_v50 = vrot.slane %v1747_v26, 4 }
 0x563   :  { %v1712_v51 = vmax.f32 %v1710_v23, %v1711_v15 }
 0x564   :  { %v1749_v42 = vmax.f32 %v1747_v26, %v1748_v50 }
 0x565   :  { %v1713_v16 = vrot.slane %v1712_v51, 2 }
 0x566   :  { %v1750_v38 = vrot.slane %v1749_v42, 2 }
 0x567   :  { %v1714_v37 = vmax.f32 %v1712_v51, %v1713_v16  ;;  %v4071_v16 = vpop.f32.mrb[72].mxu1 }
 0x568   :  { %v1751_v32 = vmax.f32 %v1749_v42, %v1750_v38  ;;  %4797 = vst [vmem:[#allocation39_spill] sm:$0xff] %v4071_v16  ;;  %v4823_v16 = vld [vmem:[#allocation37_spill] sm:$0xff] }
 0x569   :  { %v1715_v57 = vrot.slane %v1714_v37, 1 }
 0x56a   :  { %v1752_v19 = vrot.slane %v1751_v32, 1 }
 0x56b   :  { %v4059_v20 = vmax.f32 %v1714_v37, %v1715_v57  ;;  %v2081_v37 = vpop.f32.mrb[73].mxu1 }
 0x56c   :  { %v4061_v3 = vmax.f32 %v1751_v32, %v1752_v19  ;;  %2162 = vmatprep.mubr.f32.mxu1 %v2081_v37 }
 0x56d   :  { %v1754_v52 = vsub.f32 %v3867_v8, %v4059_v20  ;;  %v1756_v56 = vsub.f32 %v3871_v27, %v4059_v20  ;;  %v1758_v15 = vsub.f32 %v3875_v18, %v4059_v20  ;;  %v1760_v26 = vsub.f32 %v3883_v39, %v4059_v20 }
 0x56e   :  { %v1762_v57 = vsub.f32 %v3891_v9, %v4059_v20  ;;  %v1764_v32 = vsub.f32 %v3897_v29, %v4059_v20  ;;  %v1766_v8 = vsub.f32 %v3903_v6, %v4059_v20  ;;  %v1768_v27 = vsub.f32 %v3909_v25, %v4059_v20  ;;  %v4089_v29 = vpop.f32.mrb[74].mxu1 }
 0x56f   :  { %v1770_v18 = vsub.f32 %v3915_v1, %v4059_v20  ;;  %v1772_v39 = vsub.f32 %v3921_v24, %v4059_v20  ;;  %v1774_v42 = vsub.f32 %v3927_v54, %v4059_v20  ;;  %v1776_v9 = vsub.f32 %v3933_v43, %v4059_v20  ;;  %4798 = vst [vmem:[#allocation46_spill] sm:$0xff] %v4089_v29  ;;  %v4099_v23 = vpop.f32.mrb[75].mxu1 }
 0x570   :  { %v1778_v6 = vsub.f32 %v3939_v12, %v4059_v20  ;;  %v1780_v25 = vsub.f32 %v3945_v40, %v4059_v20  ;;  %v1782_v1 = vsub.f32 %v3951_v44, %v4059_v20  ;;  %v1784_v24 = vsub.f32 %v3957_v7, %v4059_v20  ;;  %4799 = vst [vmem:[#allocation40_spill] sm:$0xff] %v4099_v23  ;;  %v4109_v51 = vpop.f32.mrb[76].mxu1 }
 0x571   :  { %v1786_v54 = vsub.f32 %v3963_v34, %v4059_v20  ;;  %v1788_v43 = vsub.f32 %v3969_v11, %v4059_v20  ;;  %v1790_v12 = vsub.f32 %v3975_v41, %v4059_v20  ;;  %v1792_v40 = vsub.f32 %v3981_v21, %v4059_v20  ;;  %4800 = vst [vmem:[#allocation44_spill] sm:$0xff] %v4109_v51  ;;  %v4119_v31 = vpop.f32.mrb[77].mxu1 }
 0x572   :  { %v1794_v44 = vsub.f32 %v3987_v53, %v4059_v20  ;;  %v1796_v7 = vsub.f32 %v3993_v28, %v4059_v20  ;;  %v1798_v34 = vsub.f32 %v3999_v10, %v4059_v20  ;;  %v1800_v11 = vsub.f32 %v4005_v14, %v4059_v20  ;;  %4801 = vst [vmem:[#allocation50_spill] sm:$0xff] %v4119_v31  ;;  %v4129_v49 = vpop.f32.mrb[78].mxu1 }
 0x573   :  { %4802 = vst [vmem:[#allocation52_spill] sm:$0xff] %v4129_v49  ;;  %v4139_v50 = vpop.f32.mrb[79].mxu1  ;;  %v1818_v38 = vmul.f32 1.442695, %v1754_v52  ;;  %v1822_v19 = vmul.f32 1.442695, %v1756_v56 }
 0x574   :  { %4803 = vst [vmem:[#allocation38_spill] sm:$0xff] %v4139_v50  ;;  %v1826_v37 = vmul.f32 1.442695, %v1758_v15  ;;  %v1830_v53 = vmul.f32 1.442695, %v1760_v26 }
 0x575   :  { %2640 = vpow2.f32 %v1818_v38  ;;  %v1834_v14 = vmul.f32 1.442695, %v1762_v57  ;;  %v1838_v21 = vmul.f32 1.442695, %v1764_v32  ;;  %v1842_v13 = vmul.f32 1.442695, %v1766_v8 }
 0x576   :  { %2642 = vpow2.f32 %v1822_v19  ;;  %v1846_v4 = vmul.f32 1.442695, %v1768_v27  ;;  %v1850_v41 = vmul.f32 1.442695, %v1770_v18  ;;  %v1854_v49 = vmul.f32 1.442695, %v1772_v39 }
 0x577   :  { %2644 = vpow2.f32 %v1826_v37  ;;  %v1858_v52 = vmul.f32 1.442695, %v1774_v42  ;;  %v1862_v56 = vmul.f32 1.442695, %v1776_v9  ;;  %v1866_v15 = vmul.f32 1.442695, %v1778_v6 }
 0x578   :  { %2646 = vpow2.f32 %v1830_v53  ;;  %v1870_v28 = vmul.f32 1.442695, %v1780_v25  ;;  %v1874_v26 = vmul.f32 1.442695, %v1782_v1  ;;  %v1878_v50 = vmul.f32 1.442695, %v1784_v24 }
 0x579   :  { %2648 = vpow2.f32 %v1834_v14  ;;  %v1882_v10 = vmul.f32 1.442695, %v1786_v54  ;;  %v1886_v38 = vmul.f32 1.442695, %v1788_v43  ;;  %v1890_v57 = vmul.f32 1.442695, %v1790_v12 }
 0x57a   :  { %2650 = vpow2.f32 %v1838_v21  ;;  %v1894_v32 = vmul.f32 1.442695, %v1792_v40  ;;  %v1898_v19 = vmul.f32 1.442695, %v1794_v44  ;;  %v4145_v8 = vmul.f32 1.442695, %v1796_v7 }
 0x57b   :  { %2652 = vpow2.f32 %v1842_v13  ;;  %v4147_v27 = vmul.f32 1.442695, %v1798_v34  ;;  %v4149_v18 = vmul.f32 1.442695, %v1800_v11  ;;  %v4804_v44 = vld [vmem:[#allocation18_spill] sm:$0xff]  ;;  %v4806_v53 = vld [vmem:[#allocation20_spill] sm:$0xff] }
 0x57c   :  { %2654 = vpow2.f32 %v1846_v4  ;;  %v4807_v13 = vld [vmem:[#allocation21_spill] sm:$0xff]  ;;  %v4808_v37 = vld [vmem:[#allocation22_spill] sm:$0xff]  ;;  %v4810_v40 = vld [vmem:[#allocation24_spill] sm:$0xff] }
 0x57d   :  { %2656 = vpow2.f32 %v1850_v41  ;;  %v4805_v41 = vld [vmem:[#allocation19_spill] sm:$0xff]  ;;  %v4811_v12 = vld [vmem:[#allocation25_spill] sm:$0xff]  ;;  %v4812_v4 = vld [vmem:[#allocation26_spill] sm:$0xff] }
 0x57e   :  { %2658 = vpow2.f32 %v1854_v49  ;;  %v4813_v24 = vld [vmem:[#allocation27_spill] sm:$0xff]  ;;  %v4814_v1 = vld [vmem:[#allocation28_spill] sm:$0xff]  ;;  %v4815_v49 = vld [vmem:[#allocation29_spill] sm:$0xff] }
 0x57f   :  { %v4159_v25 = vpop.eup %2640  ;;  %2660 = vpow2.f32 %v1858_v52  ;;  %v4816_v9 = vld [vmem:[#allocation30_spill] sm:$0xff]  ;;  %v4817_v52 = vld [vmem:[#allocation31_spill] sm:$0xff]  ;;  %v4818_v39 = vld [vmem:[#allocation33_spill] sm:$0xff] }
 0x580   :  { %v4167_v43 = vpop.eup %2642  ;;  %2662 = vpow2.f32 %v1862_v56  ;;  %v4809_v56 = vld [vmem:[#allocation23_spill] sm:$0xff] }
 0x581   :  { %v4175_v34 = vpop.eup %2644  ;;  %2664 = vpow2.f32 %v1866_v15  ;;  %v1946_v11 = vadd.f32 %v4167_v43, %v4159_v25  ;;  %v4822_v15 = vld [vmem:[#allocation34_spill] sm:$0xff] }
 0x582   :  { %v4183_v14 = vpop.eup %2646  ;;  %2666 = vpow2.f32 %v1870_v28  ;;  %v4820_v28 = vld [vmem:[#allocation36_spill] sm:$0xff] }
 0x583   :  { %v4191_v7 = vpop.eup %2648  ;;  %2668 = vpow2.f32 %v1874_v26  ;;  %v1947_v21 = vadd.f32 %v4175_v34, %v1946_v11 }
 0x584   :  { %v4198_v54 = vpop.eup %2650  ;;  %2670 = vpow2.f32 %v1878_v50 }
 0x585   :  { %v4206_v6 = vpop.eup %2652  ;;  %2672 = vpow2.f32 %v1882_v10  ;;  %v1948_v11 = vadd.f32 %v4183_v14, %v1947_v21 }
 0x586   :  { %v4213_v42 = vpop.eup %2654  ;;  %2674 = vpow2.f32 %v1886_v38 }
 0x587   :  { %v4221_v31 = vpop.eup %2656  ;;  %2676 = vpow2.f32 %v1890_v57  ;;  %v1949_v21 = vadd.f32 %v4191_v7, %v1948_v11  ;;  %v4824_v11 = vsub.f32 %v4011_v47, %v4059_v20 }
 0x588   :  { %v4228_v23 = vpop.eup %2658  ;;  %2678 = vpow2.f32 %v1894_v32  ;;  %v4825_v32 = vsub.f32 %v4017_v48, %v4059_v20 }
 0x589   :  { %v4236_v51 = vpop.eup %2660  ;;  %2680 = vpow2.f32 %v1898_v19  ;;  %v1914_v50 = vmul.f32 1.442695, %v4824_v11  ;;  %v1950_v38 = vadd.f32 %v4198_v54, %v1949_v21  ;;  %v4826_v19 = vsub.f32 %v4023_v59, %v4059_v20 }
 0x58a   :  { %v4242_v29 = vpop.eup %2662  ;;  %2682 = vpow2.f32 %v4145_v8  ;;  %v1918_v10 = vmul.f32 1.442695, %v4825_v32  ;;  %v4827_v8 = vsub.f32 %v4029_v62, %v4059_v20  ;;  %v4831_v62 = vsub.f32 %v4047_v46, %v4059_v20 }
 0x58b   :  { %v4248_v26 = vpop.eup %2664  ;;  %2684 = vpow2.f32 %v4147_v27  ;;  %v1922_v57 = vmul.f32 1.442695, %v4826_v19  ;;  %v1951_v47 = vadd.f32 %v4206_v6, %v1950_v38  ;;  %v4828_v27 = vsub.f32 %v4035_v0, %v4059_v20 }
 0x58c   :  { %v4255_v11 = vpop.eup %2666  ;;  %2686 = vpow2.f32 %v4149_v18  ;;  %v1926_v21 = vmul.f32 1.442695, %v4827_v8  ;;  %v4829_v38 = vsub.f32 %v4041_v61, %v4059_v20 }
 0x58d   :  { %v4261_v48 = vpop.eup %2668  ;;  %2688 = vpow2.f32 %v1914_v50  ;;  %v1930_v32 = vmul.f32 1.442695, %v4828_v27  ;;  %v1952_v59 = vadd.f32 %v4213_v42, %v1951_v47  ;;  %v1938_v50 = vmul.f32 1.442695, %v4831_v62 }
 0x58e   :  { %v4267_v19 = vpop.eup %2670  ;;  %2690 = vpow2.f32 %v1918_v10  ;;  %v1934_v18 = vmul.f32 1.442695, %v4829_v38  ;;  %v4832_v47 = vsub.f32 %v4053_v30, %v4059_v20  ;;  %v4835_v30 = vsub.f32 %v3879_v17, %v4061_v3 }
 0x58f   :  { %v4272_v2 = vpop.eup %2672  ;;  %2692 = vpow2.f32 %v1922_v57  ;;  %v1953_v8 = vadd.f32 %v4221_v31, %v1952_v59  ;;  %v4833_v57 = vsub.f32 %v3869_v36, %v4061_v3  ;;  %v4834_v59 = vsub.f32 %v3873_v5, %v4061_v3 }
 0x590   :  { %4830 = vst [vmem:[#allocation42_spill] sm:$0xff] %v4272_v2  ;;  %v4278_v0 = vpop.eup %2674  ;;  %2694 = vpow2.f32 %v1926_v21  ;;  %v1942_v10 = vmul.f32 1.442695, %v4832_v47  ;;  %v1828_v20 = vmul.f32 1.442695, %v4835_v30  ;;  %v4836_v36 = vsub.f32 %v3887_v63, %v4061_v3 }
 0x591   :  { %v4283_v27 = vpop.eup %2676  ;;  %2696 = vpow2.f32 %v1930_v32  ;;  %v1954_v61 = vadd.f32 %v4228_v23, %v1953_v8  ;;  %v1820_v38 = vmul.f32 1.442695, %v4833_v57  ;;  %v1824_v21 = vmul.f32 1.442695, %v4834_v59 }
 0x592   :  { %v4289_v46 = vpop.eup %2678  ;;  %2698 = vpow2.f32 %v1934_v18  ;;  %v1832_v8 = vmul.f32 1.442695, %v4836_v36  ;;  %v4837_v18 = vsub.f32 %v3894_v35, %v4061_v3  ;;  %v4838_v5 = vsub.f32 %v3900_v58, %v4061_v3 }
 0x593   :  { %v4297_v62 = vpop.eup %2680  ;;  %2700 = vpow2.f32 %v1938_v50  ;;  %v1955_v32 = vadd.f32 %v4236_v51, %v1954_v61  ;;  %v4839_v50 = vsub.f32 %v3906_v22, %v4061_v3  ;;  %v4840_v61 = vsub.f32 %v3912_v60, %v4061_v3 }
 0x594   :  { %v1836_v47 = vmul.f32 1.442695, %v4837_v18  ;;  %v4306_v57 = vpop.eup %2682  ;;  %2702 = vpow2.f32 %v1942_v10  ;;  %v1840_v17 = vmul.f32 1.442695, %v4838_v5  ;;  %v4841_v10 = vsub.f32 %v3918_v33, %v4061_v3 }
 0x595   :  { %v1844_v59 = vmul.f32 1.442695, %v4839_v50  ;;  %v1848_v63 = vmul.f32 1.442695, %v4840_v61  ;;  %v4317_v30 = vpop.eup %2684  ;;  %v1956_v35 = vadd.f32 %v4242_v29, %v1955_v32  ;;  %2704 = vpow2.f32 %v1820_v38 }
 0x596   :  { %v1852_v36 = vmul.f32 1.442695, %v4841_v10  ;;  %v4842_v58 = vsub.f32 %v3924_v55, %v4061_v3  ;;  %v4326_v5 = vpop.eup %2686  ;;  %2706 = vpow2.f32 %v1824_v21 }
 0x597   :  { %v4334_v32 = vpop.eup %2688  ;;  %v1957_v33 = vadd.f32 %v4248_v26, %v1956_v35  ;;  %2708 = vpow2.f32 %v1828_v20 }
 0x598   :  { %v1856_v18 = vmul.f32 1.442695, %v4842_v58  ;;  %v4341_v50 = vpop.eup %2690  ;;  %2710 = vpow2.f32 %v1832_v8  ;;  %v4843_v8 = vsub.f32 %v3930_v45, %v4061_v3  ;;  %v4844_v58 = vsub.f32 %v4804_v44, %v4061_v3 }
 0x599   :  { %v4349_v35 = vpop.eup %2692  ;;  %v1958_v20 = vadd.f32 %v4255_v11, %v1957_v33  ;;  %2712 = vpow2.f32 %v1836_v47 }
 0x59a   :  { %v4356_v55 = vpop.eup %2694  ;;  %2714 = vpow2.f32 %v1840_v17  ;;  %v1860_v21 = vmul.f32 1.442695, %v4843_v8  ;;  %v1864_v10 = vmul.f32 1.442695, %v4844_v58 }
 0x59b   :  { %v4364_v33 = vpop.eup %2696  ;;  %v1959_v47 = vadd.f32 %v4261_v48, %v1958_v20  ;;  %2716 = vpow2.f32 %v1844_v59  ;;  %v4845_v59 = vsub.f32 %v4805_v41, %v4061_v3  ;;  %v4850_v41 = vsub.f32 %v4810_v40, %v4061_v3 }
 0x59c   :  { %v4372_v38 = vpop.eup %2698  ;;  %2718 = vpow2.f32 %v1848_v63  ;;  %v4846_v63 = vsub.f32 %v4806_v53, %v4061_v3  ;;  %v4849_v53 = vsub.f32 %v4809_v56, %v4061_v3  ;;  %v4853_v40 = vsub.f32 %v4813_v24, %v4061_v3 }
 0x59d   :  { %v4377_v61 = vpop.eup %2700  ;;  %v1960_v60 = vadd.f32 %v4267_v19, %v1959_v47  ;;  %2720 = vpow2.f32 %v1852_v36  ;;  %v1868_v45 = vmul.f32 1.442695, %v4845_v59  ;;  %v4847_v36 = vsub.f32 %v4807_v13, %v4061_v3 }
 0x59e   :  { %v4385_v8 = vpop.eup %2702  ;;  %2722 = vpow2.f32 %v1856_v18  ;;  %v1872_v44 = vmul.f32 1.442695, %v4846_v63  ;;  %v4848_v18 = vsub.f32 %v4808_v37, %v4061_v3  ;;  %v1884_v63 = vmul.f32 1.442695, %v4849_v53 }
 0x59f   :  { %v2705_v58 = vpop.eup %2704  ;;  %v1961_v17 = vadd.f32 %v4272_v2, %v1960_v60  ;;  %2724 = vpow2.f32 %v1860_v21  ;;  %v1876_v47 = vmul.f32 1.442695, %v4847_v36  ;;  %v4851_v37 = vsub.f32 %v4811_v12, %v4061_v3 }
 0x5a0   :  { %v2707_v59 = vpop.eup %2706  ;;  %2726 = vpow2.f32 %v1864_v10  ;;  %v1880_v20 = vmul.f32 1.442695, %v4848_v18  ;;  %v1888_v10 = vmul.f32 1.442695, %v4850_v41  ;;  %v1900_v41 = vmul.f32 1.442695, %v4853_v40 }
 0x5a1   :  { %v2709_v22 = vpop.eup %2708  ;;  %v1962_v60 = vadd.f32 %v4278_v0, %v1961_v17  ;;  %2728 = vpow2.f32 %v1868_v45  ;;  %v1983_v21 = vadd.f32 %v2707_v59, %v2705_v58  ;;  %v2417_v13 = vpack.c.bf16 %v2707_v59, %v2705_v58 }
 0x5a2   :  { %v2711_v36 = vpop.eup %2710  ;;  %2730 = vpow2.f32 %v1872_v44  ;;  %v1892_v18 = vmul.f32 1.442695, %v4851_v37  ;;  %v4852_v44 = vsub.f32 %v4812_v4, %v4061_v3  ;;  %v4854_v12 = vpack.c.bf16 %v4167_v43, %v4159_v25 }
 0x5a3   :  { %v2713_v2 = vpop.eup %2712  ;;  %v1963_v56 = vadd.f32 %v4283_v27, %v1962_v60  ;;  %2732 = vpow2.f32 %v1876_v47  ;;  %v1984_v53 = vadd.f32 %v2709_v22, %v1983_v21  ;;  %2418 = vmatprep.subr.bf16.mxu1 %v2417_v13  ;;  %v2421_v17 = vpack.c.bf16 %v2711_v36, %v2709_v22 }
 0x5a4   :  { %v2715_v45 = vpop.eup %2714  ;;  %2734 = vpow2.f32 %v1880_v20  ;;  %v1896_v58 = vmul.f32 1.442695, %v4852_v44  ;;  %2420 = vmatpush1.bf16.msra.mxu1 %v4854_v12  ;;  %v4855_v4 = vsub.f32 %v4814_v1, %v4061_v3  ;;  %v4856_v24 = vsub.f32 %v4815_v49, %v4061_v3  ;;  %v4861_v12 = vld [vmem:[#allocation35_spill] sm:$0xff] }
 0x5a5   :  { %v2717_v59 = vpop.eup %2716  ;;  %v1964_v47 = vadd.f32 %v4289_v46, %v1963_v56  ;;  %2736 = vpow2.f32 %v1884_v63  ;;  %v1985_v60 = vadd.f32 %v2711_v36, %v1984_v53  ;;  %2422 = vmatprep.subr.bf16.mxu1 %v2421_v17  ;;  %v2425_v22 = vpack.c.bf16 %v2715_v45, %v2713_v2 }
 0x5a6   :  { %v2719_v20 = vpop.eup %2718  ;;  %2738 = vpow2.f32 %v1888_v10  ;;  %v1904_v21 = vmul.f32 1.442695, %v4855_v4  ;;  %v1908_v13 = vmul.f32 1.442695, %v4856_v24  ;;  %v4857_v36 = vsub.f32 %v4816_v9, %v4061_v3 }
 0x5a7   :  { %v2721_v37 = vpop.eup %2720  ;;  %v1965_v25 = vadd.f32 %v4297_v62, %v1964_v47  ;;  %2740 = vpow2.f32 %v1892_v18  ;;  %v1986_v43 = vadd.f32 %v2713_v2, %v1985_v60  ;;  %v2429_v56 = vpack.c.bf16 %v2719_v20, %v2717_v59 }
 0x5a8   :  { %v2723_v63 = vpop.eup %2722  ;;  %2742 = vpow2.f32 %v1896_v58  ;;  %v1912_v10 = vmul.f32 1.442695, %v4857_v36  ;;  %v4858_v1 = vsub.f32 %v4817_v52, %v4061_v3  ;;  %v4859_v49 = vpack.c.bf16 %v4183_v14, %v4175_v34 }
 0x5a9   :  { %v2725_v17 = vpop.eup %2724  ;;  %v1966_v44 = vadd.f32 %v4306_v57, %v1965_v25  ;;  %2744 = vpow2.f32 %v1900_v41  ;;  %v1987_v2 = vadd.f32 %v2715_v45, %v1986_v43  ;;  %v2433_v18 = vpack.c.bf16 %v2723_v63, %v2721_v37 }
 0x5aa   :  { %v1916_v53 = vmul.f32 1.442695, %v4858_v1  ;;  %2424 = vmatpush1.bf16.msra.mxu1 %v4859_v49  ;;  %v2727_v58 = vpop.eup %2726  ;;  %2746 = vpow2.f32 %v1904_v21  ;;  %v4860_v9 = vsub.f32 %v4818_v39, %v4061_v3  ;;  %v4862_v52 = vsub.f32 %v4861_v12, %v4061_v3  ;;  %v4864_v21 = vld [vmem:[#allocation32_spill] sm:$0xff] }
 0x5ab   :  { %2426 = vmatprep.subr.bf16.mxu1 %v2425_v22  ;;  %v2729_v60 = vpop.eup %2728  ;;  %v1967_v34 = vadd.f32 %v4317_v30, %v1966_v44  ;;  %2748 = vpow2.f32 %v1908_v13  ;;  %v1988_v14 = vadd.f32 %v2717_v59, %v1987_v2  ;;  %v2437_v4 = vpack.c.bf16 %v2727_v58, %v2725_v17 }
 0x5ac   :  { %v1920_v40 = vmul.f32 1.442695, %v4860_v9  ;;  %v1924_v47 = vmul.f32 1.442695, %v4862_v52  ;;  %v2731_v41 = vpop.eup %2730  ;;  %2750 = vpow2.f32 %v1912_v10  ;;  %v4863_v45 = vsub.f32 %v4820_v28, %v4061_v3 }
 0x5ad   :  { %v4865_v39 = vsub.f32 %v4864_v21, %v4061_v3  ;;  %v4866_v25 = vpack.c.bf16 %v4198_v54, %v4191_v7  ;;  %v2733_v43 = vpop.eup %2732  ;;  %v1968_v36 = vadd.f32 %v4326_v5, %v1967_v34  ;;  %2752 = vpow2.f32 %v1916_v53 }
 0x5ae   :  { %v1928_v22 = vmul.f32 1.442695, %v4863_v45  ;;  %v1989_v59 = vadd.f32 %v2719_v20, %v1988_v14  ;;  %v2441_v13 = vpack.c.bf16 %v2731_v41, %v2729_v60  ;;  %v2735_v10 = vpop.eup %2734  ;;  %2754 = vpow2.f32 %v1920_v40  ;;  %v4869_v20 = vld [vmem:[#allocation16_spill] sm:$0xff] }
 0x5af   :  { %v1932_v24 = vmul.f32 1.442695, %v4865_v39  ;;  %2428 = vmatpush1.bf16.msra.mxu1 %v4866_v25  ;;  %v4867_v28 = vsub.f32 %v4822_v15, %v4061_v3  ;;  %v4868_v49 = vsub.f32 %v4823_v16, %v4061_v3  ;;  %v2737_v2 = vpop.eup %2736  ;;  %v1969_v54 = vadd.f32 %v4334_v32, %v1968_v36 }
 0x5b0   :  { %2430 = vmatprep.subr.bf16.mxu1 %v2429_v56  ;;  %2756 = vpow2.f32 %v1924_v47  ;;  %v1990_v7 = vadd.f32 %v2721_v37, %v1989_v59  ;;  %v2445_v9 = vpack.c.bf16 %v2735_v10, %v2733_v43  ;;  %v2739_v53 = vpop.eup %2738  ;;  %v4870_v56 = vsub.f32 %v4869_v20, %v4061_v3 }
 0x5b1   :  { %v1936_v1 = vmul.f32 1.442695, %v4867_v28  ;;  %v1940_v44 = vmul.f32 1.442695, %v4868_v49  ;;  %2758 = vpow2.f32 %v1928_v22  ;;  %v4871_v15 = vpack.c.bf16 %v4213_v42, %v4206_v6  ;;  %v2741_v12 = vpop.eup %2740 }
 0x5b2   :  { %v1944_v40 = vmul.f32 1.442695, %v4870_v56  ;;  %v1970_v16 = vadd.f32 %v4341_v50, %v1969_v54  ;;  %2760 = vpow2.f32 %v1932_v24  ;;  %v1991_v52 = vadd.f32 %v2723_v63, %v1990_v7  ;;  %v2743_v47 = vpop.eup %2742 }
 0x5b3   :  { %2432 = vmatpush1.bf16.msra.mxu1 %v4871_v15  ;;  %v2449_v34 = vpack.c.bf16 %v2739_v53, %v2737_v2  ;;  %2762 = vpow2.f32 %v1936_v1  ;;  %v2745_v37 = vpop.eup %2744  ;;  %v2453_v3 = vpack.c.bf16 %v2743_v47, %v2741_v12  ;;  %v4872_v42 = vpack.c.bf16 %v4228_v23, %v4221_v31 }
 0x5b4   :  { %2434 = vmatprep.subr.bf16.mxu1 %v2433_v18  ;;  %v1971_v14 = vadd.f32 %v4349_v35, %v1970_v16  ;;  %2764 = vpow2.f32 %v1940_v44  ;;  %v1992_v45 = vadd.f32 %v2725_v17, %v1991_v52  ;;  %v2747_v22 = vpop.eup %2746  ;;  %v4873_v28 = vpack.c.bf16 %v4242_v29, %v4236_v51 }
 0x5b5   :  { %2766 = vpow2.f32 %v1944_v40  ;;  %v2749_v6 = vpop.eup %2748  ;;  %v2457_v18 = vpack.c.bf16 %v2747_v22, %v2745_v37  ;;  %v4875_v16 = vpack.c.bf16 %v4267_v19, %v4261_v48  ;;  %v4879_v48 = vpack.c.bf16 %v4306_v57, %v4297_v62 }
 0x5b6   :  { %v1972_v21 = vadd.f32 %v4356_v55, %v1971_v14  ;;  %v1993_v63 = vadd.f32 %v2727_v58, %v1992_v45  ;;  %v2751_v39 = vpop.eup %2750  ;;  %v4876_v14 = vld [vmem:[#allocation42_spill] sm:$0xff]  ;;  %v4882_v62 = vpack.c.bf16 %v4356_v55, %v4349_v35  ;;  %v4889_v35 = vld [vmem:[#allocation44_spill] sm:$0xff] }
 0x5b7   :  { %2436 = vmatpush1.bf16.msra.mxu1 %v4872_v42  ;;  %v2753_v24 = vpop.eup %2752  ;;  %v2461_v59 = vpack.c.bf16 %v2751_v39, %v2749_v6  ;;  %v4888_v55 = vld [vmem:[#allocation50_spill] sm:$0xff] }
 0x5b8   :  { %2438 = vmatprep.subr.bf16.mxu1 %v2437_v4  ;;  %v1973_v25 = vadd.f32 %v4364_v33, %v1972_v21  ;;  %v1994_v36 = vadd.f32 %v2729_v60, %v1993_v63  ;;  %v2755_v17 = vpop.eup %2754  ;;  %v4874_v60 = vpack.c.bf16 %v4255_v11, %v4248_v26  ;;  %v4877_v26 = vpack.c.bf16 %v4278_v0, %v4876_v14  ;;  %v4890_v42 = vld [vmem:[#allocation38_spill] sm:$0xff] }
 0x5b9   :  { %v2465_v49 = vpack.c.bf16 %v2755_v17, %v2753_v24  ;;  %v4880_v0 = vpack.c.bf16 %v4326_v5, %v4317_v30  ;;  %v4883_v30 = vpack.c.bf16 %v4372_v38, %v4364_v33 }
 0x5ba   :  { %v2757_v1 = vpop.eup %2756  ;;  %v1974_v23 = vadd.f32 %v4372_v38, %v1973_v25  ;;  %v1995_v31 = vadd.f32 %v2731_v41, %v1994_v36  ;;  %v4891_v38 = vld [vmem:[#allocation52_spill] sm:$0xff] }
 0x5bb   :  { %2440 = vmatpush1.bf16.msra.mxu1 %v4873_v28  ;;  %v2759_v58 = vpop.eup %2758 }
 0x5bc   :  { %2442 = vmatprep.subr.bf16.mxu1 %v2441_v13  ;;  %v2761_v4 = vpop.eup %2760  ;;  %v1975_v44 = vadd.f32 %v4377_v61, %v1974_v23  ;;  %v1996_v54 = vadd.f32 %v2733_v43, %v1995_v31  ;;  %v2469_v7 = vpack.c.bf16 %v2759_v58, %v2757_v1 }
 0x5bd   :  { %v2763_v20 = vpop.eup %2762 }
 0x5be   :  { %v2765_v56 = vpop.eup %2764  ;;  %v1976_v29 = vadd.f32 %v4385_v8, %v1975_v44  ;;  %v1997_v51 = vadd.f32 %v2735_v10, %v1996_v54  ;;  %v2473_v40 = vpack.c.bf16 %v2763_v20, %v2761_v4  ;;  %v4878_v10 = vpack.c.bf16 %v4289_v46, %v4283_v27  ;;  %v2786_v54 = vld [vmem:[#allocation3 + $0x40] sm:$0xff] }
 0x5bf   :  { %2444 = vmatpush1.bf16.msra.mxu1 %v4874_v60  ;;  %v2767_v41 = vpop.eup %2766  ;;  %v4881_v27 = vpack.c.bf16 %v4341_v50, %v4334_v32  ;;  %v4884_v32 = vpack.c.bf16 %v4385_v8, %v4377_v61  ;;  %v4885_v50 = vld [vmem:[#allocation39_spill] sm:$0xff] }
 0x5c0   :  { %2446 = vmatprep.subr.bf16.mxu1 %v2445_v9  ;;  %v1998_v13 = vadd.f32 %v2737_v2, %v1997_v51  ;;  %v2477_v15 = vpack.c.bf16 %v2767_v41, %v2765_v56  ;;  %v1977_v33 = vrot.slane %v1976_v29, 4 }
 0x5c2   :  { %v1999_v43 = vadd.f32 %v2739_v53, %v1998_v13  ;;  %v1978_v21 = vadd.f32 %v1977_v33, %v1976_v29 }
 0x5c3   :  { %2448 = vmatpush1.bf16.msra.mxu1 %v4875_v16 }
 0x5c4   :  { %2450 = vmatprep.subr.bf16.mxu1 %v2449_v34  ;;  %v2000_v52 = vadd.f32 %v2741_v12, %v1999_v43  ;;  %v1979_v61 = vrot.slane %v1978_v21, 2 }
 0x5c6   :  { %v2001_v11 = vadd.f32 %v2743_v47, %v2000_v52 }
 0x5c7   :  { %2452 = vmatpush1.bf16.msra.mxu1 %v4877_v26 }
 0x5c8   :  { %2454 = vmatprep.subr.bf16.mxu1 %v2453_v3  ;;  %v2002_v45 = vadd.f32 %v2745_v37, %v2001_v11  ;;  %v4886_v3 = vld [vmem:[#allocation40_spill] sm:$0xff]  ;;  %v2790_v11 = vld [vmem:[#allocation3 + $0x60] sm:$0xff] }
 0x5ca   :  { %v2003_v2 = vadd.f32 %v2747_v22, %v2002_v45  ;;  %v4887_v22 = vld [vmem:[#allocation46_spill] sm:$0xff] }
 0x5cb   :  { %2456 = vmatpush1.bf16.msra.mxu1 %v4878_v10  ;;  %v2791_v10 = vld [vmem:[#allocation3 + $0x68] sm:$0xff] }
 0x5cc   :  { %2458 = vmatprep.subr.bf16.mxu1 %v2457_v18  ;;  %v2004_v9 = vadd.f32 %v2749_v6, %v2003_v2  ;;  %v1980_v18 = vadd.f32 %v1979_v61, %v1978_v21 }
 0x5ce   :  { %v2005_v19 = vadd.f32 %v2751_v39, %v2004_v9 }
 0x5cf   :  { %2460 = vmatpush1.bf16.msra.mxu1 %v4879_v48 }
 0x5d0   :  { %2462 = vmatprep.subr.bf16.mxu1 %v2461_v59  ;;  %v2006_v53 = vadd.f32 %v2753_v24, %v2005_v19  ;;  %v1981_v24 = vrot.slane %v1980_v18, 1 }
 0x5d2   :  { %v2007_v12 = vadd.f32 %v2755_v17, %v2006_v53  ;;  %v1982_v36 = vadd.f32 %v1981_v24, %v1980_v18 }
 0x5d3   :  { %2464 = vmatpush1.bf16.msra.mxu1 %v4880_v0  ;;  %v2792_v0 = vld [vmem:[#allocation3 + $0x70] sm:$0xff] }
 0x5d4   :  { %2466 = vmatprep.subr.bf16.mxu1 %v2465_v49  ;;  %v2008_v34 = vadd.f32 %v2757_v1, %v2007_v12  ;;  %2768 = vrcp.f32 %v1982_v36  ;;  %v4892_v1 = vld [vmem:[#allocation17_spill] sm:$0xff] }
 0x5d6   :  { %v2009_v46 = vadd.f32 %v2759_v58, %v2008_v34  ;;  %v2793_v34 = vld [vmem:[#allocation3 + $0x78] sm:$0xff] }
 0x5d7   :  { %2468 = vmatpush1.bf16.msra.mxu1 %v4881_v27 }
 0x5d8   :  { %2470 = vmatprep.subr.bf16.mxu1 %v2469_v7  ;;  %v2010_v47 = vadd.f32 %v2761_v4, %v2009_v46 }
 0x5da   :  { %v2011_v57 = vadd.f32 %v2763_v20, %v2010_v47  ;;  %v2787_v20 = vld [vmem:[#allocation3 + $0x48] sm:$0xff] }
 0x5db   :  { %2472 = vmatpush1.bf16.msra.mxu1 %v4882_v62 }
 0x5dc   :  { %2474 = vmatprep.subr.bf16.mxu1 %v2473_v40  ;;  %v2012_v37 = vadd.f32 %v2765_v56, %v2011_v57 }
 0x5de   :  { %v2013_v5 = vadd.f32 %v2767_v41, %v2012_v37  ;;  %v2769_v17 = vpop.eup %2768  ;;  %v2788_v41 = vld [vmem:[#allocation3 + $0x50] sm:$0xff] }
 0x5df   :  { %2476 = vmatpush1.bf16.msra.mxu1 %v4883_v30  ;;  %v2189_v23 = vmul.f32 %v2769_v17, %v4892_v1 }
 0x5e0   :  { %2478 = vmatprep.subr.bf16.mxu1 %v2477_v15  ;;  %v2014_v6 = vrot.slane %v2013_v5, 4  ;;  %v2789_v15 = vld [vmem:[#allocation3 + $0x58] sm:$0xff] }
 0x5e2   :  { %v2015_v63 = vadd.f32 %v2014_v6, %v2013_v5 }
 0x5e3   :  { %2480 = vmatpush1.bf16.msra.mxu1 %v4884_v32 }
 0x5e4   :  { %v2016_v8 = vrot.slane %v2015_v63, 2 }
 0x5e6   :  { %2163 = vmatmul.mubr.f32.vlgmr.msra.gmra.mrb[80].mxu1 %v4885_v50  ;;  %v2017_v39 = vadd.f32 %v2016_v8, %v2015_v63 }
 0x5e7   :  { %2168 = vmatprep.mubr.f32.mxu1 %v4886_v3 }
 0x5e8   :  { %v2018_v25 = vrot.slane %v2017_v39, 1 }
 0x5ea   :  { %2169 = vmatmul.mubr.f32.gmra.mrb[82].mxu1 %v4887_v22  ;;  %v2019_v59 = vadd.f32 %v2018_v25, %v2017_v39 }
 0x5eb   :  { %2174 = vmatprep.mubr.f32.mxu1 %v4888_v55 }
 0x5ec   :  { %2770 = vrcp.f32 %v2019_v59 }
 0x5ee   :  { %2175 = vmatmul.mubr.f32.gmra.mrb[84].mxu1 %v4889_v35 }
 0x5ef   :  { %2180 = vmatprep.mubr.f32.mxu1 %v4890_v42 }
 0x5f2   :  { %2181 = vmatmul.mubr.f32.gmra.mrb[86].mxu1 %v4891_v38 }
 0x5f6   :  { %v2771_v28 = vpop.eup %2770 }
 0x5f7   :  { %v2190_v49 = vmul.f32 %v2771_v28, %v4892_v1 }
 0x6b9   :  { %v2164_v31 = vpop.f32.mrb[80].mxu1 }
 0x6ba   :  { %v2191_v58 = vmul.f32 %v2189_v23, %v2164_v31  ;;  %v2166_v4 = vpop.f32.mrb[81].mxu1 }
 0x6bb   :  { %v2192_v44 = vmul.f32 %v2190_v49, %v2166_v4 }
 0x6bc   :  { %v2199_v7 = vadd.f32 %v2786_v54, %v2191_v58 }
 0x6bd   :  { %v2200_v60 = vadd.f32 %v2787_v20, %v2192_v44  ;;  %v2170_v56 = vpop.f32.mrb[82].mxu1 }
 0x6be   :  { %2208 = vst [vmem:[#allocation11 + $0x40] sm:$0xff] %v2199_v7  ;;  %v2193_v29 = vmul.f32 %v2189_v23, %v2170_v56  ;;  %v2172_v51 = vpop.f32.mrb[83].mxu1 }
 0x6bf   :  { %2209 = vst [vmem:[#allocation11 + $0x48] sm:$0xff] %v2200_v60  ;;  %v2194_v40 = vmul.f32 %v2190_v49, %v2172_v51 }
 0x6c0   :  { %v2201_v13 = vadd.f32 %v2788_v41, %v2193_v29 }
 0x6c1   :  { %v2202_v16 = vadd.f32 %v2789_v15, %v2194_v40  ;;  %v2176_v43 = vpop.f32.mrb[84].mxu1 }
 0x6c2   :  { %2210 = vst [vmem:[#allocation11 + $0x50] sm:$0xff] %v2201_v13  ;;  %v2195_v52 = vmul.f32 %v2189_v23, %v2176_v43  ;;  %v2178_v14 = vpop.f32.mrb[85].mxu1 }
 0x6c3   :  { %2211 = vst [vmem:[#allocation11 + $0x58] sm:$0xff] %v2202_v16  ;;  %v2196_v26 = vmul.f32 %v2190_v49, %v2178_v14 }
 0x6c4   :  { %v2203_v45 = vadd.f32 %v2790_v11, %v2195_v52 }
 0x6c5   :  { %v2204_v2 = vadd.f32 %v2791_v10, %v2196_v26  ;;  %v2182_v9 = vpop.f32.mrb[86].mxu1 }
 0x6c6   :  { %2212 = vst [vmem:[#allocation11 + $0x60] sm:$0xff] %v2203_v45  ;;  %v2197_v48 = vmul.f32 %v2189_v23, %v2182_v9  ;;  %v2184_v19 = vpop.f32.mrb[87].mxu1 }
 0x6c7   :  { %2213 = vst [vmem:[#allocation11 + $0x68] sm:$0xff] %v2204_v2  ;;  %v2198_v53 = vmul.f32 %v2190_v49, %v2184_v19 }
 0x6c8   :  { %v2205_v12 = vadd.f32 %v2792_v0, %v2197_v48 }
 0x6c9   :  { %v2206_v27 = vadd.f32 %v2793_v34, %v2198_v53 }
 0x6ca   :  { %2214 = vst [vmem:[#allocation11 + $0x70] sm:$0xff] %v2205_v12 }
 0x6cb   :  { %2215 = vst [vmem:[#allocation11 + $0x78] sm:$0xff] %v2206_v27 }
 0x6cc   :  { %2893 = shalt.err (!%p2890_p8)
}
 0x6cd   :  { %s2894_s25 = scalar_lea.hbm %s4539_s5, 2048 }
 0x6ce   :  { %p2895_p9 = scmp.ne.s32.totalorder %s4539_s5, %s2894_s25  ;;  %p2898_p10 = scmp.lt.u32.totalorder %s2894_s25, %s4539_s5 }
 0x6d0   :  { %p2900_p11 = pnand %p2898_p10, %p2895_p9 }
 0x6d2   :  { %2903 = shalt.err (!%p2900_p11)
}
 0x6d3   :  { %2227 = dma.vmem_to_hbm [thread:$0]  %s2222_s21, 2048, %s4539_s5, [#allocation5], %s2916_s2, %s2916_s2, %s2917_s17  }
 0x6d4   :  { %2910 = dma.done.wait [#allocation5], 2048  }
 0x6d5   :  { %2911 = vsyncadd [#allocation5], 4294965248 }
 0x6d6   :  { %2231 = vsyncpa [#allocation4], 1 }
 0x6d7   :  { %2232 = vsyncpa [#allocation7], 1 }
 0x6d8   :  { %2233 = vsyncpa [#allocation10], 1 }
 0x6d9   :  { %2234 = vsyncpa [#allocation5], 1 }

</bundles_post_ra>
